<compile_context>
chip_gen: v5e
topology: v5e:2x2
jax: 0.10.0
libtpu: 0.0.40
codegen_flags: <defaults>
</compile_context>

<pallas_src>
import functools

import jax
import jax.numpy as jnp
from jax.experimental import pallas as pl
from jax.experimental.pallas import tpu as pltpu


# ----------------------- parameter setup (plain JAX glue) -----------------------

def _round_up(x: int, m: int) -> int:
    return ((x + m - 1) // m) * m


def _fspecial_gauss_1d(size: int, sigma: float) -> jnp.ndarray:
    """Same as the torch _fspecial_gauss_1d; returns shape (size,) float32."""
    coords = jnp.arange(size, dtype=jnp.float32) - (size // 2)
    g = jnp.exp(-(coords ** 2) / (2.0 * sigma ** 2))
    return g / jnp.sum(g)


def _band_matrix(g: jnp.ndarray, size_in: int, size_out: int,
                 size_out_pad: int) -> jnp.ndarray:
    """Band matrix B (size_in, size_out_pad) with B[r, c] = g[r - c] when
    0 <= r-c < len(g) and c < size_out, else 0, so (x @ B)[c] = sum_k x[c+k]*g[k]
    == 'valid' cross-correlation == F.conv2d(padding=0) (Gaussian is symmetric).
    Columns >= size_out are zero (lane/sublane alignment padding)."""
    k_len = g.shape[0]
    rows = jnp.arange(size_in)[:, None]
    cols = jnp.arange(size_out_pad)[None, :]
    k = rows - cols
    valid = (k >= 0) & (k < k_len) & (cols < size_out)
    return jnp.where(valid, g[jnp.clip(k, 0, k_len - 1)], 0.0).astype(jnp.float32)


# --------------------------------- Pallas kernel ---------------------------------

def _ssim_kernel(x_ref, y_ref, gw_ref, ght_ref, out_ref, *,
                 nb, channels, c1, c2, hout, wout, inv_count, out_rows):
    gw = gw_ref[...]                     # (W,  Wa)  Wa = round_up(Wout, 128)
    ght = ght_ref[...]                   # (Hb, H)   Hb = round_up(Hout, 8)
    hb = ght.shape[0]
    wa = gw.shape[1]

    # Validity mask over the padded output tile: padded positions would evaluate
    # to ssim == 1 and bias the mean.  Built once, applied once per channel.
    row = jax.lax.broadcasted_iota(jnp.int32, (hb, wa), 0)   # Hout index (sublane)
    col = jax.lax.broadcasted_iota(jnp.int32, (hb, wa), 1)   # Wout index (lane)
    mask = ((row < hout) & (col < wout)).astype(jnp.float32)

    out_iota = jax.lax.broadcasted_iota(jnp.int32, (out_rows, 128), 0)
    acc = jnp.zeros((out_rows, 128), jnp.float32)

    for n in range(nb):                  # images in this block (compile-time)
        ssim_sum = jnp.float32(0.0)
        for c in range(channels):        # per-channel => bounded live VMEM set
            xc = x_ref[n, c].astype(jnp.float32)     # (H, W), cast on the VMEM tile
            yc = y_ref[n, c].astype(jnp.float32)

            # Stage 1: filter along W.  Contraction dim W is the minor (lane)
            # dim of xc and the major dim of gw -> natural (M,K)x(K,N) MXU
            # layout, no relayouts.
            t1_x = jnp.dot(xc, gw, preferred_element_type=jnp.float32)
            t1_y = jnp.dot(yc, gw, preferred_element_type=jnp.float32)
            t1_xx = jnp.dot(xc * xc, gw, preferred_element_type=jnp.float32)
            t1_yy = jnp.dot(yc * yc, gw, preferred_element_type=jnp.float32)
            t1_xy = jnp.dot(xc * yc, gw, preferred_element_type=jnp.float32)

            # Stage 2: filter along H.  The small pre-transposed GhT is the LHS
            # (K minor), the big (H, Wa) intermediate is the RHS (K major), so
            # no XLU transpose of the large tensor is ever generated.
            mu1 = jnp.dot(ght, t1_x, preferred_element_type=jnp.float32)
            mu2 = jnp.dot(ght, t1_y, preferred_element_type=jnp.float32)
            exx = jnp.dot(ght, t1_xx, preferred_element_type=jnp.float32)
            eyy = jnp.dot(ght, t1_yy, preferred_element_type=jnp.float32)
            exy = jnp.dot(ght, t1_xy, preferred_element_type=jnp.float32)

            mu1_mu2 = mu1 * mu2
            mu1_sq = mu1 * mu1
            mu2_sq = mu2 * mu2
            sigma1_sq = exx - mu1_sq          # compensation == 1.0
            sigma2_sq = eyy - mu2_sq
            sigma12 = exy - mu1_mu2

            # EUP reciprocal + one Newton-Raphson step: keeps the divide off the
            # VALU slots while recovering ~f32 accuracy.
            d1 = mu1_sq + mu2_sq + c1
            d2 = sigma1_sq + sigma2_sq + c2
            r1 = pl.reciprocal(d1, approx=True)
            r1 = r1 * (2.0 - d1 * r1)
            r2 = pl.reciprocal(d2, approx=True)
            r2 = r2 * (2.0 - d2 * r2)

            ssim_map = (2.0 * mu1_mu2 + c1) * (2.0 * sigma12 + c2) * (r1 * r2)
            ssim_sum = ssim_sum + jnp.sum(ssim_map * mask)

        per_image = ssim_sum * inv_count
        acc = jnp.where(out_iota == n, per_image, acc)

    # One dense (out_rows, 128) store per step; wrapper reads column 0.
    out_ref[...] = acc


# ----------------------------------- wrapper -----------------------------------

class SSIM:
    """JAX/Pallas port of the torch SSIM module (win_size=11, win_sigma=1.5,
    data_range=255, size_average=True, channel=3).  forward returns only
    ssim_val, matching torch's SSIM.forward (the cs value is discarded there)."""

    def __init__(self, win_size=11, win_sigma=1.5, data_range=255,
                 size_average=True, channel=3):
        assert win_size % 2 == 1, "Window size must be odd."
        self.win_size = int(win_size)
        self.win_1d = _fspecial_gauss_1d(win_size, win_sigma)   # (win_size,)
        self.data_range = data_range
        self.size_average = size_average
        self.channel = channel

    @staticmethod
    def _images_per_block(N, C, H, W, in_bytes):
        # Batch several small images per grid step so the stage-1 matmul M dim
        # and the per-step fixed overhead are amortized; one image per step as
        # soon as C*H rows already keep the MXU busy.  Nb must divide N.
        target = max(1, 512 // max(1, C * H))
        vmem_cap = max(1, (4 * 1024 * 1024) // max(1, 2 * C * H * W * in_bytes))
        cap = max(1, min(target, vmem_cap, N))
        nb = 1
        for d in range(1, cap + 1):
            if N % d == 0:
                nb = d
        return nb

    @staticmethod
    def _vmem_limit_bytes(nb, C, H, W, hb, wa, in_bytes):
        # Per-grid-step footprint: X/Y blocks (double-buffered), band matrices,
        # and the per-(image,channel) live working set of the filter/elementwise
        # phase (5 stage-1 maps, ~12 stage-2/elementwise maps, input temporaries).
        inputs = 2 * 2 * nb * C * H * W * in_bytes
        filters = 2 * (W * wa + hb * H) * 4
        work = (5 * H * wa + 12 * hb * wa + 4 * H * W) * 4
        est = inputs + filters + work + 8 * 128 * 4
        phys = 128 * 1024 * 1024
        try:
            info = pltpu.get_tpu_info()
            phys = int(getattr(info, "vmem_capacity_bytes", phys) or phys)
        except Exception:
            pass  # fall back to the v5e/v6e physical size
        # Generation-aware cap: ~102 MiB on 128-MiB parts (v5e/v6e), ~51 MiB on
        # v7x (64 MiB physical per TensorCore).
        return int(min(max(2 * est, 24 * 1024 * 1024), int(phys * 0.8)))

    def __call__(self, X, Y):
        assert X.ndim == 4 and X.shape == Y.shape and X.dtype == Y.dtype
        N, C, H, W = X.shape
        hout = H - self.win_size + 1
        wout = W - self.win_size + 1
        assert hout > 0 and wout > 0, "spatial dims must be >= win_size"

        wa = _round_up(wout, 128)   # lane dim of the filtered maps
        hb = _round_up(hout, 8)     # sublane dim of the filtered maps

        gw = _band_matrix(self.win_1d, W, wout, wa)            # (W, Wa)
        ght = _band_matrix(self.win_1d, H, hout, hb).T         # (Hb, H), pre-transposed

        c1 = (0.01 * self.data_range) ** 2
        c2 = (0.03 * self.data_range) ** 2
        inv_count = 1.0 / float(C * hout * wout)

        in_bytes = jnp.dtype(X.dtype).itemsize
        nb = self._images_per_block(N, C, H, W, in_bytes)
        num_blocks = N // nb
        out_rows = max(8, _round_up(nb, 8))

        kernel = functools.partial(
            _ssim_kernel, nb=nb, channels=C, c1=c1, c2=c2,
            hout=hout, wout=wout, inv_count=inv_count, out_rows=out_rows)

        vmem_limit = self._vmem_limit_bytes(nb, C, H, W, hb, wa, in_bytes)

        out = pl.pallas_call(
            kernel,
            out_shape=jax.ShapeDtypeStruct((num_blocks, out_rows, 128), jnp.float32),
            grid=(num_blocks,),
            in_specs=[
                pl.BlockSpec((nb, C, H, W), lambda i: (i, 0, 0, 0)),   # X
                pl.BlockSpec((nb, C, H, W), lambda i: (i, 0, 0, 0)),   # Y
                pl.BlockSpec((W, wa), lambda i: (0, 0)),               # Gw band
                pl.BlockSpec((hb, H), lambda i: (0, 0)),               # GhT band
            ],
            out_specs=pl.BlockSpec((None, out_rows, 128), lambda i: (i, 0, 0)),
            compiler_params=pltpu.CompilerParams(
                dimension_semantics=("parallel",),
                vmem_limit_bytes=vmem_limit,
            ),
        )(X, Y, gw, ght)

        per_image = out[:, :nb, 0].reshape(N)
        if self.size_average:
            return jnp.mean(per_image)      # scalar, matches torch forward
        return per_image


# ------------------------------------ main ------------------------------------

if __name__ == "__main__":
    key = jax.random.PRNGKey(0)
    kx, ky = jax.random.split(key)

    # Small but valid shapes: spatial dims must be >= win_size (11).
    N, C, H, W = 2, 3, 16, 16
    X = jax.random.uniform(kx, (N, C, H, W), dtype=jnp.float32) * 255.0
    Y = jnp.clip(X + 5.0 * jax.random.normal(ky, (N, C, H, W), dtype=jnp.float32),
                 0.0, 255.0)

    mod = SSIM(win_size=11, win_sigma=1.5, data_range=255,
               size_average=True, channel=C)
    out = jax.block_until_ready(mod(X, Y))

    # Lightweight pure-JAX (non-Pallas) reference with identical math.
    def _ref_ssim(X, Y, win_size=11, win_sigma=1.5, data_range=255):
        g = _fspecial_gauss_1d(win_size, win_sigma)
        hout = X.shape[2] - win_size + 1
        wout = X.shape[3] - win_size + 1
        bw = _band_matrix(g, X.shape[3], wout, wout)   # (W, wout)
        bh = _band_matrix(g, X.shape[2], hout, hout)   # (H, hout)
        hi = jax.lax.Precision.HIGHEST

        def filt(a):
            t = jnp.einsum("nchw,wb->nchb", a, bw, precision=hi)
            return jnp.einsum("nchb,ha->ncab", t, bh, precision=hi)

        C1 = (0.01 * data_range) ** 2
        C2 = (0.03 * data_range) ** 2
        mu1, mu2 = filt(X), filt(Y)
        s1 = filt(X * X) - mu1 * mu1
        s2 = filt(Y * Y) - mu2 * mu2
        s12 = filt(X * Y) - mu1 * mu2
        cs = (2 * s12 + C2) / (s1 + s2 + C2)
        ssim_map = (2 * mu1 * mu2 + C1) / (mu1 * mu1 + mu2 * mu2 + C1) * cs
        return jnp.mean(ssim_map.reshape(X.shape[0], -1), axis=1).mean()

    ref = jax.block_until_ready(_ref_ssim(X, Y))

    assert out.shape == (), "size_average=True must yield a scalar"
    assert bool(jnp.isfinite(out)), "SSIM value must be finite"
    assert abs(float(out) - float(ref)) < 1e-2, (float(out), float(ref))
    print("KERNEL_OK")
</pallas_src>

<mosaic_0001>
module attributes {stable_mosaic.version = 11 : i64} {
  func.func @_ssim_kernel(%arg0: i32, %arg1: memref<2x3x16x16xf32, #tpu.memory_space<vmem>>, %arg2: memref<2x3x16x16xf32, #tpu.memory_space<vmem>>, %arg3: memref<16x128xf32, #tpu.memory_space<vmem>>, %arg4: memref<8x16xf32, #tpu.memory_space<vmem>>, %arg5: memref<1x8x128xf32, #tpu.memory_space<vmem>>) attributes {dimension_semantics = [#tpu.dimension_semantics<parallel>], iteration_bounds = array<i64: 1>, scalar_prefetch = 0 : i64, scratch_operands = 0 : i64, tpu.core_type = #tpu.core_type<tc>, window_params = [{transform_indices = @transform_0, window_bounds = array<i64: 2, 3, 16, 16>}, {transform_indices = @transform_1, window_bounds = array<i64: 2, 3, 16, 16>}, {pipeline_mode = #tpu.pipeline_mode<synchronous>, transform_indices = @transform_2, window_bounds = array<i64: 16, 128>}, {pipeline_mode = #tpu.pipeline_mode<synchronous>, transform_indices = @transform_3, window_bounds = array<i64: 8, 16>}, {transform_indices = @transform_4, window_bounds = array<i64: 1, 8, 128>}]} {
    %c0 = arith.constant 0 : index
    %c0_0 = arith.constant 0 : index
    %0 = vector.load %arg3[%c0, %c0_0] : memref<16x128xf32, #tpu.memory_space<vmem>>, vector<16x128xf32>
    %c0_1 = arith.constant 0 : index
    %c0_2 = arith.constant 0 : index
    %1 = vector.load %arg4[%c0_1, %c0_2] : memref<8x16xf32, #tpu.memory_space<vmem>>, vector<8x16xf32>
    %2 = tpu.iota {dimensions = array<i32: 0>} : vector<8x128xi32>
    %3 = tpu.iota {dimensions = array<i32: 1>} : vector<8x128xi32>
    %c6_i32 = arith.constant 6 : i32
    %4 = vector.broadcast %c6_i32 : i32 to vector<8x128xi32>
    %5 = arith.cmpi slt, %2, %4 : vector<8x128xi32>
    %c6_i32_3 = arith.constant 6 : i32
    %6 = vector.broadcast %c6_i32_3 : i32 to vector<8x128xi32>
    %7 = arith.cmpi slt, %3, %6 : vector<8x128xi32>
    %8 = arith.andi %5, %7 : vector<8x128xi1>
    %9 = arith.extui %8 : vector<8x128xi1> to vector<8x128xi32>
    %10 = arith.sitofp %9 : vector<8x128xi32> to vector<8x128xf32>
    %11 = tpu.iota {dimensions = array<i32: 0>} : vector<8x128xi32>
    %cst = arith.constant 0.000000e+00 : f32
    %12 = vector.broadcast %cst : f32 to vector<8x128xf32>
    %c0_4 = arith.constant 0 : index
    %c0_5 = arith.constant 0 : index
    %c0_6 = arith.constant 0 : index
    %c0_7 = arith.constant 0 : index
    %13 = vector.load %arg1[%c0_4, %c0_5, %c0_6, %c0_7] : memref<2x3x16x16xf32, #tpu.memory_space<vmem>>, vector<1x1x16x16xf32>
    %14 = vector.shape_cast %13 : vector<1x1x16x16xf32> to vector<16x16xf32>
    %c0_8 = arith.constant 0 : index
    %c0_9 = arith.constant 0 : index
    %c0_10 = arith.constant 0 : index
    %c0_11 = arith.constant 0 : index
    %15 = vector.load %arg2[%c0_8, %c0_9, %c0_10, %c0_11] : memref<2x3x16x16xf32, #tpu.memory_space<vmem>>, vector<1x1x16x16xf32>
    %16 = vector.shape_cast %15 : vector<1x1x16x16xf32> to vector<16x16xf32>
    %cst_12 = arith.constant dense<0.000000e+00> : vector<16x128xf32>
    %17 = tpu.matmul %14, %0, %cst_12 {dimension_numbers = #tpu.dot_dimension_numbers<[1], [0], [0], [1], [0, 0, 1, 1], [], []>} : vector<16x16xf32>, vector<16x128xf32>, vector<16x128xf32> -> vector<16x128xf32>
    %cst_13 = arith.constant dense<0.000000e+00> : vector<16x128xf32>
    %18 = tpu.matmul %16, %0, %cst_13 {dimension_numbers = #tpu.dot_dimension_numbers<[1], [0], [0], [1], [0, 0, 1, 1], [], []>} : vector<16x16xf32>, vector<16x128xf32>, vector<16x128xf32> -> vector<16x128xf32>
    %19 = arith.mulf %14, %14 : vector<16x16xf32>
    %cst_14 = arith.constant dense<0.000000e+00> : vector<16x128xf32>
    %20 = tpu.matmul %19, %0, %cst_14 {dimension_numbers = #tpu.dot_dimension_numbers<[1], [0], [0], [1], [0, 0, 1, 1], [], []>} : vector<16x16xf32>, vector<16x128xf32>, vector<16x128xf32> -> vector<16x128xf32>
    %21 = arith.mulf %16, %16 : vector<16x16xf32>
    %cst_15 = arith.constant dense<0.000000e+00> : vector<16x128xf32>
    %22 = tpu.matmul %21, %0, %cst_15 {dimension_numbers = #tpu.dot_dimension_numbers<[1], [0], [0], [1], [0, 0, 1, 1], [], []>} : vector<16x16xf32>, vector<16x128xf32>, vector<16x128xf32> -> vector<16x128xf32>
    %23 = arith.mulf %14, %16 : vector<16x16xf32>
    %cst_16 = arith.constant dense<0.000000e+00> : vector<16x128xf32>
    %24 = tpu.matmul %23, %0, %cst_16 {dimension_numbers = #tpu.dot_dimension_numbers<[1], [0], [0], [1], [0, 0, 1, 1], [], []>} : vector<16x16xf32>, vector<16x128xf32>, vector<16x128xf32> -> vector<16x128xf32>
    %cst_17 = arith.constant dense<0.000000e+00> : vector<8x128xf32>
    %25 = tpu.matmul %1, %17, %cst_17 {dimension_numbers = #tpu.dot_dimension_numbers<[1], [0], [0], [1], [0, 0, 1, 1], [], []>} : vector<8x16xf32>, vector<16x128xf32>, vector<8x128xf32> -> vector<8x128xf32>
    %cst_18 = arith.constant dense<0.000000e+00> : vector<8x128xf32>
    %26 = tpu.matmul %1, %18, %cst_18 {dimension_numbers = #tpu.dot_dimension_numbers<[1], [0], [0], [1], [0, 0, 1, 1], [], []>} : vector<8x16xf32>, vector<16x128xf32>, vector<8x128xf32> -> vector<8x128xf32>
    %cst_19 = arith.constant dense<0.000000e+00> : vector<8x128xf32>
    %27 = tpu.matmul %1, %20, %cst_19 {dimension_numbers = #tpu.dot_dimension_numbers<[1], [0], [0], [1], [0, 0, 1, 1], [], []>} : vector<8x16xf32>, vector<16x128xf32>, vector<8x128xf32> -> vector<8x128xf32>
    %cst_20 = arith.constant dense<0.000000e+00> : vector<8x128xf32>
    %28 = tpu.matmul %1, %22, %cst_20 {dimension_numbers = #tpu.dot_dimension_numbers<[1], [0], [0], [1], [0, 0, 1, 1], [], []>} : vector<8x16xf32>, vector<16x128xf32>, vector<8x128xf32> -> vector<8x128xf32>
    %cst_21 = arith.constant dense<0.000000e+00> : vector<8x128xf32>
    %29 = tpu.matmul %1, %24, %cst_21 {dimension_numbers = #tpu.dot_dimension_numbers<[1], [0], [0], [1], [0, 0, 1, 1], [], []>} : vector<8x16xf32>, vector<16x128xf32>, vector<8x128xf32> -> vector<8x128xf32>
    %30 = arith.mulf %25, %26 : vector<8x128xf32>
    %31 = arith.mulf %25, %25 : vector<8x128xf32>
    %32 = arith.mulf %26, %26 : vector<8x128xf32>
    %33 = arith.subf %27, %31 : vector<8x128xf32>
    %34 = arith.subf %28, %32 : vector<8x128xf32>
    %35 = arith.subf %29, %30 : vector<8x128xf32>
    %36 = arith.addf %31, %32 : vector<8x128xf32>
    %cst_22 = arith.constant 6.502500e+00 : f32
    %37 = vector.broadcast %cst_22 : f32 to vector<8x128xf32>
    %38 = arith.addf %36, %37 : vector<8x128xf32>
    %39 = arith.addf %33, %34 : vector<8x128xf32>
    %cst_23 = arith.constant 5.852250e+01 : f32
    %40 = vector.broadcast %cst_23 : f32 to vector<8x128xf32>
    %41 = arith.addf %39, %40 : vector<8x128xf32>
    %42 = tpu.reciprocal %38 {approx = true} : vector<8x128xf32> -> vector<8x128xf32>
    %43 = arith.mulf %38, %42 : vector<8x128xf32>
    %cst_24 = arith.constant 2.000000e+00 : f32
    %44 = vector.broadcast %cst_24 : f32 to vector<8x128xf32>
    %45 = arith.subf %44, %43 : vector<8x128xf32>
    %46 = arith.mulf %42, %45 : vector<8x128xf32>
    %47 = tpu.reciprocal %41 {approx = true} : vector<8x128xf32> -> vector<8x128xf32>
    %48 = arith.mulf %41, %47 : vector<8x128xf32>
    %cst_25 = arith.constant 2.000000e+00 : f32
    %49 = vector.broadcast %cst_25 : f32 to vector<8x128xf32>
    %50 = arith.subf %49, %48 : vector<8x128xf32>
    %51 = arith.mulf %47, %50 : vector<8x128xf32>
    %cst_26 = arith.constant 2.000000e+00 : f32
    %52 = vector.broadcast %cst_26 : f32 to vector<8x128xf32>
    %53 = arith.mulf %52, %30 : vector<8x128xf32>
    %cst_27 = arith.constant 6.502500e+00 : f32
    %54 = vector.broadcast %cst_27 : f32 to vector<8x128xf32>
    %55 = arith.addf %53, %54 : vector<8x128xf32>
    %cst_28 = arith.constant 2.000000e+00 : f32
    %56 = vector.broadcast %cst_28 : f32 to vector<8x128xf32>
    %57 = arith.mulf %56, %35 : vector<8x128xf32>
    %cst_29 = arith.constant 5.852250e+01 : f32
    %58 = vector.broadcast %cst_29 : f32 to vector<8x128xf32>
    %59 = arith.addf %57, %58 : vector<8x128xf32>
    %60 = arith.mulf %55, %59 : vector<8x128xf32>
    %61 = arith.mulf %46, %51 : vector<8x128xf32>
    %62 = arith.mulf %60, %61 : vector<8x128xf32>
    %63 = arith.mulf %62, %10 : vector<8x128xf32>
    %64 = vector.shape_cast %63 : vector<8x128xf32> to vector<1x8x128xf32>
    %cst_30 = arith.constant dense<0.000000e+00> : vector<1xf32>
    %65 = vector.multi_reduction <add>, %64, %cst_30 [1, 2] : vector<1x8x128xf32> to vector<1xf32>
    %66 = vector.shape_cast %65 : vector<1xf32> to vector<1x1x1xf32>
    %67 = vector.extract %66[0, 0, 0] : f32 from vector<1x1x1xf32>
    %cst_31 = arith.constant 0.000000e+00 : f32
    %68 = arith.addf %cst_31, %67 : f32
    %c0_32 = arith.constant 0 : index
    %c1 = arith.constant 1 : index
    %c0_33 = arith.constant 0 : index
    %c0_34 = arith.constant 0 : index
    %69 = vector.load %arg1[%c0_32, %c1, %c0_33, %c0_34] : memref<2x3x16x16xf32, #tpu.memory_space<vmem>>, vector<1x1x16x16xf32>
    %70 = vector.shape_cast %69 : vector<1x1x16x16xf32> to vector<16x16xf32>
    %c0_35 = arith.constant 0 : index
    %c1_36 = arith.constant 1 : index
    %c0_37 = arith.constant 0 : index
    %c0_38 = arith.constant 0 : index
    %71 = vector.load %arg2[%c0_35, %c1_36, %c0_37, %c0_38] : memref<2x3x16x16xf32, #tpu.memory_space<vmem>>, vector<1x1x16x16xf32>
    %72 = vector.shape_cast %71 : vector<1x1x16x16xf32> to vector<16x16xf32>
    %cst_39 = arith.constant dense<0.000000e+00> : vector<16x128xf32>
    %73 = tpu.matmul %70, %0, %cst_39 {dimension_numbers = #tpu.dot_dimension_numbers<[1], [0], [0], [1], [0, 0, 1, 1], [], []>} : vector<16x16xf32>, vector<16x128xf32>, vector<16x128xf32> -> vector<16x128xf32>
    %cst_40 = arith.constant dense<0.000000e+00> : vector<16x128xf32>
    %74 = tpu.matmul %72, %0, %cst_40 {dimension_numbers = #tpu.dot_dimension_numbers<[1], [0], [0], [1], [0, 0, 1, 1], [], []>} : vector<16x16xf32>, vector<16x128xf32>, vector<16x128xf32> -> vector<16x128xf32>
    %75 = arith.mulf %70, %70 : vector<16x16xf32>
    %cst_41 = arith.constant dense<0.000000e+00> : vector<16x128xf32>
    %76 = tpu.matmul %75, %0, %cst_41 {dimension_numbers = #tpu.dot_dimension_numbers<[1], [0], [0], [1], [0, 0, 1, 1], [], []>} : vector<16x16xf32>, vector<16x128xf32>, vector<16x128xf32> -> vector<16x128xf32>
    %77 = arith.mulf %72, %72 : vector<16x16xf32>
    %cst_42 = arith.constant dense<0.000000e+00> : vector<16x128xf32>
    %78 = tpu.matmul %77, %0, %cst_42 {dimension_numbers = #tpu.dot_dimension_numbers<[1], [0], [0], [1], [0, 0, 1, 1], [], []>} : vector<16x16xf32>, vector<16x128xf32>, vector<16x128xf32> -> vector<16x128xf32>
    %79 = arith.mulf %70, %72 : vector<16x16xf32>
    %cst_43 = arith.constant dense<0.000000e+00> : vector<16x128xf32>
    %80 = tpu.matmul %79, %0, %cst_43 {dimension_numbers = #tpu.dot_dimension_numbers<[1], [0], [0], [1], [0, 0, 1, 1], [], []>} : vector<16x16xf32>, vector<16x128xf32>, vector<16x128xf32> -> vector<16x128xf32>
    %cst_44 = arith.constant dense<0.000000e+00> : vector<8x128xf32>
    %81 = tpu.matmul %1, %73, %cst_44 {dimension_numbers = #tpu.dot_dimension_numbers<[1], [0], [0], [1], [0, 0, 1, 1], [], []>} : vector<8x16xf32>, vector<16x128xf32>, vector<8x128xf32> -> vector<8x128xf32>
    %cst_45 = arith.constant dense<0.000000e+00> : vector<8x128xf32>
    %82 = tpu.matmul %1, %74, %cst_45 {dimension_numbers = #tpu.dot_dimension_numbers<[1], [0], [0], [1], [0, 0, 1, 1], [], []>} : vector<8x16xf32>, vector<16x128xf32>, vector<8x128xf32> -> vector<8x128xf32>
    %cst_46 = arith.constant dense<0.000000e+00> : vector<8x128xf32>
    %83 = tpu.matmul %1, %76, %cst_46 {dimension_numbers = #tpu.dot_dimension_numbers<[1], [0], [0], [1], [0, 0, 1, 1], [], []>} : vector<8x16xf32>, vector<16x128xf32>, vector<8x128xf32> -> vector<8x128xf32>
    %cst_47 = arith.constant dense<0.000000e+00> : vector<8x128xf32>
    %84 = tpu.matmul %1, %78, %cst_47 {dimension_numbers = #tpu.dot_dimension_numbers<[1], [0], [0], [1], [0, 0, 1, 1], [], []>} : vector<8x16xf32>, vector<16x128xf32>, vector<8x128xf32> -> vector<8x128xf32>
    %cst_48 = arith.constant dense<0.000000e+00> : vector<8x128xf32>
    %85 = tpu.matmul %1, %80, %cst_48 {dimension_numbers = #tpu.dot_dimension_numbers<[1], [0], [0], [1], [0, 0, 1, 1], [], []>} : vector<8x16xf32>, vector<16x128xf32>, vector<8x128xf32> -> vector<8x128xf32>
    %86 = arith.mulf %81, %82 : vector<8x128xf32>
    %87 = arith.mulf %81, %81 : vector<8x128xf32>
    %88 = arith.mulf %82, %82 : vector<8x128xf32>
    %89 = arith.subf %83, %87 : vector<8x128xf32>
    %90 = arith.subf %84, %88 : vector<8x128xf32>
    %91 = arith.subf %85, %86 : vector<8x128xf32>
    %92 = arith.addf %87, %88 : vector<8x128xf32>
    %cst_49 = arith.constant 6.502500e+00 : f32
    %93 = vector.broadcast %cst_49 : f32 to vector<8x128xf32>
    %94 = arith.addf %92, %93 : vector<8x128xf32>
    %95 = arith.addf %89, %90 : vector<8x128xf32>
    %cst_50 = arith.constant 5.852250e+01 : f32
    %96 = vector.broadcast %cst_50 : f32 to vector<8x128xf32>
    %97 = arith.addf %95, %96 : vector<8x128xf32>
    %98 = tpu.reciprocal %94 {approx = true} : vector<8x128xf32> -> vector<8x128xf32>
    %99 = arith.mulf %94, %98 : vector<8x128xf32>
    %cst_51 = arith.constant 2.000000e+00 : f32
    %100 = vector.broadcast %cst_51 : f32 to vector<8x128xf32>
    %101 = arith.subf %100, %99 : vector<8x128xf32>
    %102 = arith.mulf %98, %101 : vector<8x128xf32>
    %103 = tpu.reciprocal %97 {approx = true} : vector<8x128xf32> -> vector<8x128xf32>
    %104 = arith.mulf %97, %103 : vector<8x128xf32>
    %cst_52 = arith.constant 2.000000e+00 : f32
    %105 = vector.broadcast %cst_52 : f32 to vector<8x128xf32>
    %106 = arith.subf %105, %104 : vector<8x128xf32>
    %107 = arith.mulf %103, %106 : vector<8x128xf32>
    %cst_53 = arith.constant 2.000000e+00 : f32
    %108 = vector.broadcast %cst_53 : f32 to vector<8x128xf32>
    %109 = arith.mulf %108, %86 : vector<8x128xf32>
    %cst_54 = arith.constant 6.502500e+00 : f32
    %110 = vector.broadcast %cst_54 : f32 to vector<8x128xf32>
    %111 = arith.addf %109, %110 : vector<8x128xf32>
    %cst_55 = arith.constant 2.000000e+00 : f32
    %112 = vector.broadcast %cst_55 : f32 to vector<8x128xf32>
    %113 = arith.mulf %112, %91 : vector<8x128xf32>
    %cst_56 = arith.constant 5.852250e+01 : f32
    %114 = vector.broadcast %cst_56 : f32 to vector<8x128xf32>
    %115 = arith.addf %113, %114 : vector<8x128xf32>
    %116 = arith.mulf %111, %115 : vector<8x128xf32>
    %117 = arith.mulf %102, %107 : vector<8x128xf32>
    %118 = arith.mulf %116, %117 : vector<8x128xf32>
    %119 = arith.mulf %118, %10 : vector<8x128xf32>
    %120 = vector.shape_cast %119 : vector<8x128xf32> to vector<1x8x128xf32>
    %cst_57 = arith.constant dense<0.000000e+00> : vector<1xf32>
    %121 = vector.multi_reduction <add>, %120, %cst_57 [1, 2] : vector<1x8x128xf32> to vector<1xf32>
    %122 = vector.shape_cast %121 : vector<1xf32> to vector<1x1x1xf32>
    %123 = vector.extract %122[0, 0, 0] : f32 from vector<1x1x1xf32>
    %124 = arith.addf %68, %123 : f32
    %c0_58 = arith.constant 0 : index
    %c2 = arith.constant 2 : index
    %c0_59 = arith.constant 0 : index
    %c0_60 = arith.constant 0 : index
    %125 = vector.load %arg1[%c0_58, %c2, %c0_59, %c0_60] : memref<2x3x16x16xf32, #tpu.memory_space<vmem>>, vector<1x1x16x16xf32>
    %126 = vector.shape_cast %125 : vector<1x1x16x16xf32> to vector<16x16xf32>
    %c0_61 = arith.constant 0 : index
    %c2_62 = arith.constant 2 : index
    %c0_63 = arith.constant 0 : index
    %c0_64 = arith.constant 0 : index
    %127 = vector.load %arg2[%c0_61, %c2_62, %c0_63, %c0_64] : memref<2x3x16x16xf32, #tpu.memory_space<vmem>>, vector<1x1x16x16xf32>
    %128 = vector.shape_cast %127 : vector<1x1x16x16xf32> to vector<16x16xf32>
    %cst_65 = arith.constant dense<0.000000e+00> : vector<16x128xf32>
    %129 = tpu.matmul %126, %0, %cst_65 {dimension_numbers = #tpu.dot_dimension_numbers<[1], [0], [0], [1], [0, 0, 1, 1], [], []>} : vector<16x16xf32>, vector<16x128xf32>, vector<16x128xf32> -> vector<16x128xf32>
    %cst_66 = arith.constant dense<0.000000e+00> : vector<16x128xf32>
    %130 = tpu.matmul %128, %0, %cst_66 {dimension_numbers = #tpu.dot_dimension_numbers<[1], [0], [0], [1], [0, 0, 1, 1], [], []>} : vector<16x16xf32>, vector<16x128xf32>, vector<16x128xf32> -> vector<16x128xf32>
    %131 = arith.mulf %126, %126 : vector<16x16xf32>
    %cst_67 = arith.constant dense<0.000000e+00> : vector<16x128xf32>
    %132 = tpu.matmul %131, %0, %cst_67 {dimension_numbers = #tpu.dot_dimension_numbers<[1], [0], [0], [1], [0, 0, 1, 1], [], []>} : vector<16x16xf32>, vector<16x128xf32>, vector<16x128xf32> -> vector<16x128xf32>
    %133 = arith.mulf %128, %128 : vector<16x16xf32>
    %cst_68 = arith.constant dense<0.000000e+00> : vector<16x128xf32>
    %134 = tpu.matmul %133, %0, %cst_68 {dimension_numbers = #tpu.dot_dimension_numbers<[1], [0], [0], [1], [0, 0, 1, 1], [], []>} : vector<16x16xf32>, vector<16x128xf32>, vector<16x128xf32> -> vector<16x128xf32>
    %135 = arith.mulf %126, %128 : vector<16x16xf32>
    %cst_69 = arith.constant dense<0.000000e+00> : vector<16x128xf32>
    %136 = tpu.matmul %135, %0, %cst_69 {dimension_numbers = #tpu.dot_dimension_numbers<[1], [0], [0], [1], [0, 0, 1, 1], [], []>} : vector<16x16xf32>, vector<16x128xf32>, vector<16x128xf32> -> vector<16x128xf32>
    %cst_70 = arith.constant dense<0.000000e+00> : vector<8x128xf32>
    %137 = tpu.matmul %1, %129, %cst_70 {dimension_numbers = #tpu.dot_dimension_numbers<[1], [0], [0], [1], [0, 0, 1, 1], [], []>} : vector<8x16xf32>, vector<16x128xf32>, vector<8x128xf32> -> vector<8x128xf32>
    %cst_71 = arith.constant dense<0.000000e+00> : vector<8x128xf32>
    %138 = tpu.matmul %1, %130, %cst_71 {dimension_numbers = #tpu.dot_dimension_numbers<[1], [0], [0], [1], [0, 0, 1, 1], [], []>} : vector<8x16xf32>, vector<16x128xf32>, vector<8x128xf32> -> vector<8x128xf32>
    %cst_72 = arith.constant dense<0.000000e+00> : vector<8x128xf32>
    %139 = tpu.matmul %1, %132, %cst_72 {dimension_numbers = #tpu.dot_dimension_numbers<[1], [0], [0], [1], [0, 0, 1, 1], [], []>} : vector<8x16xf32>, vector<16x128xf32>, vector<8x128xf32> -> vector<8x128xf32>
    %cst_73 = arith.constant dense<0.000000e+00> : vector<8x128xf32>
    %140 = tpu.matmul %1, %134, %cst_73 {dimension_numbers = #tpu.dot_dimension_numbers<[1], [0], [0], [1], [0, 0, 1, 1], [], []>} : vector<8x16xf32>, vector<16x128xf32>, vector<8x128xf32> -> vector<8x128xf32>
    %cst_74 = arith.constant dense<0.000000e+00> : vector<8x128xf32>
    %141 = tpu.matmul %1, %136, %cst_74 {dimension_numbers = #tpu.dot_dimension_numbers<[1], [0], [0], [1], [0, 0, 1, 1], [], []>} : vector<8x16xf32>, vector<16x128xf32>, vector<8x128xf32> -> vector<8x128xf32>
    %142 = arith.mulf %137, %138 : vector<8x128xf32>
    %143 = arith.mulf %137, %137 : vector<8x128xf32>
    %144 = arith.mulf %138, %138 : vector<8x128xf32>
    %145 = arith.subf %139, %143 : vector<8x128xf32>
    %146 = arith.subf %140, %144 : vector<8x128xf32>
    %147 = arith.subf %141, %142 : vector<8x128xf32>
    %148 = arith.addf %143, %144 : vector<8x128xf32>
    %cst_75 = arith.constant 6.502500e+00 : f32
    %149 = vector.broadcast %cst_75 : f32 to vector<8x128xf32>
    %150 = arith.addf %148, %149 : vector<8x128xf32>
    %151 = arith.addf %145, %146 : vector<8x128xf32>
    %cst_76 = arith.constant 5.852250e+01 : f32
    %152 = vector.broadcast %cst_76 : f32 to vector<8x128xf32>
    %153 = arith.addf %151, %152 : vector<8x128xf32>
    %154 = tpu.reciprocal %150 {approx = true} : vector<8x128xf32> -> vector<8x128xf32>
    %155 = arith.mulf %150, %154 : vector<8x128xf32>
    %cst_77 = arith.constant 2.000000e+00 : f32
    %156 = vector.broadcast %cst_77 : f32 to vector<8x128xf32>
    %157 = arith.subf %156, %155 : vector<8x128xf32>
    %158 = arith.mulf %154, %157 : vector<8x128xf32>
    %159 = tpu.reciprocal %153 {approx = true} : vector<8x128xf32> -> vector<8x128xf32>
    %160 = arith.mulf %153, %159 : vector<8x128xf32>
    %cst_78 = arith.constant 2.000000e+00 : f32
    %161 = vector.broadcast %cst_78 : f32 to vector<8x128xf32>
    %162 = arith.subf %161, %160 : vector<8x128xf32>
    %163 = arith.mulf %159, %162 : vector<8x128xf32>
    %cst_79 = arith.constant 2.000000e+00 : f32
    %164 = vector.broadcast %cst_79 : f32 to vector<8x128xf32>
    %165 = arith.mulf %164, %142 : vector<8x128xf32>
    %cst_80 = arith.constant 6.502500e+00 : f32
    %166 = vector.broadcast %cst_80 : f32 to vector<8x128xf32>
    %167 = arith.addf %165, %166 : vector<8x128xf32>
    %cst_81 = arith.constant 2.000000e+00 : f32
    %168 = vector.broadcast %cst_81 : f32 to vector<8x128xf32>
    %169 = arith.mulf %168, %147 : vector<8x128xf32>
    %cst_82 = arith.constant 5.852250e+01 : f32
    %170 = vector.broadcast %cst_82 : f32 to vector<8x128xf32>
    %171 = arith.addf %169, %170 : vector<8x128xf32>
    %172 = arith.mulf %167, %171 : vector<8x128xf32>
    %173 = arith.mulf %158, %163 : vector<8x128xf32>
    %174 = arith.mulf %172, %173 : vector<8x128xf32>
    %175 = arith.mulf %174, %10 : vector<8x128xf32>
    %176 = vector.shape_cast %175 : vector<8x128xf32> to vector<1x8x128xf32>
    %cst_83 = arith.constant dense<0.000000e+00> : vector<1xf32>
    %177 = vector.multi_reduction <add>, %176, %cst_83 [1, 2] : vector<1x8x128xf32> to vector<1xf32>
    %178 = vector.shape_cast %177 : vector<1xf32> to vector<1x1x1xf32>
    %179 = vector.extract %178[0, 0, 0] : f32 from vector<1x1x1xf32>
    %180 = arith.addf %124, %179 : f32
    %cst_84 = arith.constant 0.00925925932 : f32
    %181 = arith.mulf %180, %cst_84 : f32
    %c0_i32 = arith.constant 0 : i32
    %182 = vector.broadcast %c0_i32 : i32 to vector<8x128xi32>
    %183 = arith.cmpi eq, %11, %182 : vector<8x128xi32>
    %184 = vector.broadcast %181 : f32 to vector<8x128xf32>
    %185 = arith.select %183, %184, %12 : vector<8x128xi1>, vector<8x128xf32>
    %c1_85 = arith.constant 1 : index
    %c0_86 = arith.constant 0 : index
    %c0_87 = arith.constant 0 : index
    %c0_88 = arith.constant 0 : index
    %186 = vector.load %arg1[%c1_85, %c0_86, %c0_87, %c0_88] : memref<2x3x16x16xf32, #tpu.memory_space<vmem>>, vector<1x1x16x16xf32>
    %187 = vector.shape_cast %186 : vector<1x1x16x16xf32> to vector<16x16xf32>
    %c1_89 = arith.constant 1 : index
    %c0_90 = arith.constant 0 : index
    %c0_91 = arith.constant 0 : index
    %c0_92 = arith.constant 0 : index
    %188 = vector.load %arg2[%c1_89, %c0_90, %c0_91, %c0_92] : memref<2x3x16x16xf32, #tpu.memory_space<vmem>>, vector<1x1x16x16xf32>
    %189 = vector.shape_cast %188 : vector<1x1x16x16xf32> to vector<16x16xf32>
    %cst_93 = arith.constant dense<0.000000e+00> : vector<16x128xf32>
    %190 = tpu.matmul %187, %0, %cst_93 {dimension_numbers = #tpu.dot_dimension_numbers<[1], [0], [0], [1], [0, 0, 1, 1], [], []>} : vector<16x16xf32>, vector<16x128xf32>, vector<16x128xf32> -> vector<16x128xf32>
    %cst_94 = arith.constant dense<0.000000e+00> : vector<16x128xf32>
    %191 = tpu.matmul %189, %0, %cst_94 {dimension_numbers = #tpu.dot_dimension_numbers<[1], [0], [0], [1], [0, 0, 1, 1], [], []>} : vector<16x16xf32>, vector<16x128xf32>, vector<16x128xf32> -> vector<16x128xf32>
    %192 = arith.mulf %187, %187 : vector<16x16xf32>
    %cst_95 = arith.constant dense<0.000000e+00> : vector<16x128xf32>
    %193 = tpu.matmul %192, %0, %cst_95 {dimension_numbers = #tpu.dot_dimension_numbers<[1], [0], [0], [1], [0, 0, 1, 1], [], []>} : vector<16x16xf32>, vector<16x128xf32>, vector<16x128xf32> -> vector<16x128xf32>
    %194 = arith.mulf %189, %189 : vector<16x16xf32>
    %cst_96 = arith.constant dense<0.000000e+00> : vector<16x128xf32>
    %195 = tpu.matmul %194, %0, %cst_96 {dimension_numbers = #tpu.dot_dimension_numbers<[1], [0], [0], [1], [0, 0, 1, 1], [], []>} : vector<16x16xf32>, vector<16x128xf32>, vector<16x128xf32> -> vector<16x128xf32>
    %196 = arith.mulf %187, %189 : vector<16x16xf32>
    %cst_97 = arith.constant dense<0.000000e+00> : vector<16x128xf32>
    %197 = tpu.matmul %196, %0, %cst_97 {dimension_numbers = #tpu.dot_dimension_numbers<[1], [0], [0], [1], [0, 0, 1, 1], [], []>} : vector<16x16xf32>, vector<16x128xf32>, vector<16x128xf32> -> vector<16x128xf32>
    %cst_98 = arith.constant dense<0.000000e+00> : vector<8x128xf32>
    %198 = tpu.matmul %1, %190, %cst_98 {dimension_numbers = #tpu.dot_dimension_numbers<[1], [0], [0], [1], [0, 0, 1, 1], [], []>} : vector<8x16xf32>, vector<16x128xf32>, vector<8x128xf32> -> vector<8x128xf32>
    %cst_99 = arith.constant dense<0.000000e+00> : vector<8x128xf32>
    %199 = tpu.matmul %1, %191, %cst_99 {dimension_numbers = #tpu.dot_dimension_numbers<[1], [0], [0], [1], [0, 0, 1, 1], [], []>} : vector<8x16xf32>, vector<16x128xf32>, vector<8x128xf32> -> vector<8x128xf32>
    %cst_100 = arith.constant dense<0.000000e+00> : vector<8x128xf32>
    %200 = tpu.matmul %1, %193, %cst_100 {dimension_numbers = #tpu.dot_dimension_numbers<[1], [0], [0], [1], [0, 0, 1, 1], [], []>} : vector<8x16xf32>, vector<16x128xf32>, vector<8x128xf32> -> vector<8x128xf32>
    %cst_101 = arith.constant dense<0.000000e+00> : vector<8x128xf32>
    %201 = tpu.matmul %1, %195, %cst_101 {dimension_numbers = #tpu.dot_dimension_numbers<[1], [0], [0], [1], [0, 0, 1, 1], [], []>} : vector<8x16xf32>, vector<16x128xf32>, vector<8x128xf32> -> vector<8x128xf32>
    %cst_102 = arith.constant dense<0.000000e+00> : vector<8x128xf32>
    %202 = tpu.matmul %1, %197, %cst_102 {dimension_numbers = #tpu.dot_dimension_numbers<[1], [0], [0], [1], [0, 0, 1, 1], [], []>} : vector<8x16xf32>, vector<16x128xf32>, vector<8x128xf32> -> vector<8x128xf32>
    %203 = arith.mulf %198, %199 : vector<8x128xf32>
    %204 = arith.mulf %198, %198 : vector<8x128xf32>
    %205 = arith.mulf %199, %199 : vector<8x128xf32>
    %206 = arith.subf %200, %204 : vector<8x128xf32>
    %207 = arith.subf %201, %205 : vector<8x128xf32>
    %208 = arith.subf %202, %203 : vector<8x128xf32>
    %209 = arith.addf %204, %205 : vector<8x128xf32>
    %cst_103 = arith.constant 6.502500e+00 : f32
    %210 = vector.broadcast %cst_103 : f32 to vector<8x128xf32>
    %211 = arith.addf %209, %210 : vector<8x128xf32>
    %212 = arith.addf %206, %207 : vector<8x128xf32>
    %cst_104 = arith.constant 5.852250e+01 : f32
    %213 = vector.broadcast %cst_104 : f32 to vector<8x128xf32>
    %214 = arith.addf %212, %213 : vector<8x128xf32>
    %215 = tpu.reciprocal %211 {approx = true} : vector<8x128xf32> -> vector<8x128xf32>
    %216 = arith.mulf %211, %215 : vector<8x128xf32>
    %cst_105 = arith.constant 2.000000e+00 : f32
    %217 = vector.broadcast %cst_105 : f32 to vector<8x128xf32>
    %218 = arith.subf %217, %216 : vector<8x128xf32>
    %219 = arith.mulf %215, %218 : vector<8x128xf32>
    %220 = tpu.reciprocal %214 {approx = true} : vector<8x128xf32> -> vector<8x128xf32>
    %221 = arith.mulf %214, %220 : vector<8x128xf32>
    %cst_106 = arith.constant 2.000000e+00 : f32
    %222 = vector.broadcast %cst_106 : f32 to vector<8x128xf32>
    %223 = arith.subf %222, %221 : vector<8x128xf32>
    %224 = arith.mulf %220, %223 : vector<8x128xf32>
    %cst_107 = arith.constant 2.000000e+00 : f32
    %225 = vector.broadcast %cst_107 : f32 to vector<8x128xf32>
    %226 = arith.mulf %225, %203 : vector<8x128xf32>
    %cst_108 = arith.constant 6.502500e+00 : f32
    %227 = vector.broadcast %cst_108 : f32 to vector<8x128xf32>
    %228 = arith.addf %226, %227 : vector<8x128xf32>
    %cst_109 = arith.constant 2.000000e+00 : f32
    %229 = vector.broadcast %cst_109 : f32 to vector<8x128xf32>
    %230 = arith.mulf %229, %208 : vector<8x128xf32>
    %cst_110 = arith.constant 5.852250e+01 : f32
    %231 = vector.broadcast %cst_110 : f32 to vector<8x128xf32>
    %232 = arith.addf %230, %231 : vector<8x128xf32>
    %233 = arith.mulf %228, %232 : vector<8x128xf32>
    %234 = arith.mulf %219, %224 : vector<8x128xf32>
    %235 = arith.mulf %233, %234 : vector<8x128xf32>
    %236 = arith.mulf %235, %10 : vector<8x128xf32>
    %237 = vector.shape_cast %236 : vector<8x128xf32> to vector<1x8x128xf32>
    %cst_111 = arith.constant dense<0.000000e+00> : vector<1xf32>
    %238 = vector.multi_reduction <add>, %237, %cst_111 [1, 2] : vector<1x8x128xf32> to vector<1xf32>
    %239 = vector.shape_cast %238 : vector<1xf32> to vector<1x1x1xf32>
    %240 = vector.extract %239[0, 0, 0] : f32 from vector<1x1x1xf32>
    %cst_112 = arith.constant 0.000000e+00 : f32
    %241 = arith.addf %cst_112, %240 : f32
    %c1_113 = arith.constant 1 : index
    %c1_114 = arith.constant 1 : index
    %c0_115 = arith.constant 0 : index
    %c0_116 = arith.constant 0 : index
    %242 = vector.load %arg1[%c1_113, %c1_114, %c0_115, %c0_116] : memref<2x3x16x16xf32, #tpu.memory_space<vmem>>, vector<1x1x16x16xf32>
    %243 = vector.shape_cast %242 : vector<1x1x16x16xf32> to vector<16x16xf32>
    %c1_117 = arith.constant 1 : index
    %c1_118 = arith.constant 1 : index
    %c0_119 = arith.constant 0 : index
    %c0_120 = arith.constant 0 : index
    %244 = vector.load %arg2[%c1_117, %c1_118, %c0_119, %c0_120] : memref<2x3x16x16xf32, #tpu.memory_space<vmem>>, vector<1x1x16x16xf32>
    %245 = vector.shape_cast %244 : vector<1x1x16x16xf32> to vector<16x16xf32>
    %cst_121 = arith.constant dense<0.000000e+00> : vector<16x128xf32>
    %246 = tpu.matmul %243, %0, %cst_121 {dimension_numbers = #tpu.dot_dimension_numbers<[1], [0], [0], [1], [0, 0, 1, 1], [], []>} : vector<16x16xf32>, vector<16x128xf32>, vector<16x128xf32> -> vector<16x128xf32>
    %cst_122 = arith.constant dense<0.000000e+00> : vector<16x128xf32>
    %247 = tpu.matmul %245, %0, %cst_122 {dimension_numbers = #tpu.dot_dimension_numbers<[1], [0], [0], [1], [0, 0, 1, 1], [], []>} : vector<16x16xf32>, vector<16x128xf32>, vector<16x128xf32> -> vector<16x128xf32>
    %248 = arith.mulf %243, %243 : vector<16x16xf32>
    %cst_123 = arith.constant dense<0.000000e+00> : vector<16x128xf32>
    %249 = tpu.matmul %248, %0, %cst_123 {dimension_numbers = #tpu.dot_dimension_numbers<[1], [0], [0], [1], [0, 0, 1, 1], [], []>} : vector<16x16xf32>, vector<16x128xf32>, vector<16x128xf32> -> vector<16x128xf32>
    %250 = arith.mulf %245, %245 : vector<16x16xf32>
    %cst_124 = arith.constant dense<0.000000e+00> : vector<16x128xf32>
    %251 = tpu.matmul %250, %0, %cst_124 {dimension_numbers = #tpu.dot_dimension_numbers<[1], [0], [0], [1], [0, 0, 1, 1], [], []>} : vector<16x16xf32>, vector<16x128xf32>, vector<16x128xf32> -> vector<16x128xf32>
    %252 = arith.mulf %243, %245 : vector<16x16xf32>
    %cst_125 = arith.constant dense<0.000000e+00> : vector<16x128xf32>
    %253 = tpu.matmul %252, %0, %cst_125 {dimension_numbers = #tpu.dot_dimension_numbers<[1], [0], [0], [1], [0, 0, 1, 1], [], []>} : vector<16x16xf32>, vector<16x128xf32>, vector<16x128xf32> -> vector<16x128xf32>
    %cst_126 = arith.constant dense<0.000000e+00> : vector<8x128xf32>
    %254 = tpu.matmul %1, %246, %cst_126 {dimension_numbers = #tpu.dot_dimension_numbers<[1], [0], [0], [1], [0, 0, 1, 1], [], []>} : vector<8x16xf32>, vector<16x128xf32>, vector<8x128xf32> -> vector<8x128xf32>
    %cst_127 = arith.constant dense<0.000000e+00> : vector<8x128xf32>
    %255 = tpu.matmul %1, %247, %cst_127 {dimension_numbers = #tpu.dot_dimension_numbers<[1], [0], [0], [1], [0, 0, 1, 1], [], []>} : vector<8x16xf32>, vector<16x128xf32>, vector<8x128xf32> -> vector<8x128xf32>
    %cst_128 = arith.constant dense<0.000000e+00> : vector<8x128xf32>
    %256 = tpu.matmul %1, %249, %cst_128 {dimension_numbers = #tpu.dot_dimension_numbers<[1], [0], [0], [1], [0, 0, 1, 1], [], []>} : vector<8x16xf32>, vector<16x128xf32>, vector<8x128xf32> -> vector<8x128xf32>
    %cst_129 = arith.constant dense<0.000000e+00> : vector<8x128xf32>
    %257 = tpu.matmul %1, %251, %cst_129 {dimension_numbers = #tpu.dot_dimension_numbers<[1], [0], [0], [1], [0, 0, 1, 1], [], []>} : vector<8x16xf32>, vector<16x128xf32>, vector<8x128xf32> -> vector<8x128xf32>
    %cst_130 = arith.constant dense<0.000000e+00> : vector<8x128xf32>
    %258 = tpu.matmul %1, %253, %cst_130 {dimension_numbers = #tpu.dot_dimension_numbers<[1], [0], [0], [1], [0, 0, 1, 1], [], []>} : vector<8x16xf32>, vector<16x128xf32>, vector<8x128xf32> -> vector<8x128xf32>
    %259 = arith.mulf %254, %255 : vector<8x128xf32>
    %260 = arith.mulf %254, %254 : vector<8x128xf32>
    %261 = arith.mulf %255, %255 : vector<8x128xf32>
    %262 = arith.subf %256, %260 : vector<8x128xf32>
    %263 = arith.subf %257, %261 : vector<8x128xf32>
    %264 = arith.subf %258, %259 : vector<8x128xf32>
    %265 = arith.addf %260, %261 : vector<8x128xf32>
    %cst_131 = arith.constant 6.502500e+00 : f32
    %266 = vector.broadcast %cst_131 : f32 to vector<8x128xf32>
    %267 = arith.addf %265, %266 : vector<8x128xf32>
    %268 = arith.addf %262, %263 : vector<8x128xf32>
    %cst_132 = arith.constant 5.852250e+01 : f32
    %269 = vector.broadcast %cst_132 : f32 to vector<8x128xf32>
    %270 = arith.addf %268, %269 : vector<8x128xf32>
    %271 = tpu.reciprocal %267 {approx = true} : vector<8x128xf32> -> vector<8x128xf32>
    %272 = arith.mulf %267, %271 : vector<8x128xf32>
    %cst_133 = arith.constant 2.000000e+00 : f32
    %273 = vector.broadcast %cst_133 : f32 to vector<8x128xf32>
    %274 = arith.subf %273, %272 : vector<8x128xf32>
    %275 = arith.mulf %271, %274 : vector<8x128xf32>
    %276 = tpu.reciprocal %270 {approx = true} : vector<8x128xf32> -> vector<8x128xf32>
    %277 = arith.mulf %270, %276 : vector<8x128xf32>
    %cst_134 = arith.constant 2.000000e+00 : f32
    %278 = vector.broadcast %cst_134 : f32 to vector<8x128xf32>
    %279 = arith.subf %278, %277 : vector<8x128xf32>
    %280 = arith.mulf %276, %279 : vector<8x128xf32>
    %cst_135 = arith.constant 2.000000e+00 : f32
    %281 = vector.broadcast %cst_135 : f32 to vector<8x128xf32>
    %282 = arith.mulf %281, %259 : vector<8x128xf32>
    %cst_136 = arith.constant 6.502500e+00 : f32
    %283 = vector.broadcast %cst_136 : f32 to vector<8x128xf32>
    %284 = arith.addf %282, %283 : vector<8x128xf32>
    %cst_137 = arith.constant 2.000000e+00 : f32
    %285 = vector.broadcast %cst_137 : f32 to vector<8x128xf32>
    %286 = arith.mulf %285, %264 : vector<8x128xf32>
    %cst_138 = arith.constant 5.852250e+01 : f32
    %287 = vector.broadcast %cst_138 : f32 to vector<8x128xf32>
    %288 = arith.addf %286, %287 : vector<8x128xf32>
    %289 = arith.mulf %284, %288 : vector<8x128xf32>
    %290 = arith.mulf %275, %280 : vector<8x128xf32>
    %291 = arith.mulf %289, %290 : vector<8x128xf32>
    %292 = arith.mulf %291, %10 : vector<8x128xf32>
    %293 = vector.shape_cast %292 : vector<8x128xf32> to vector<1x8x128xf32>
    %cst_139 = arith.constant dense<0.000000e+00> : vector<1xf32>
    %294 = vector.multi_reduction <add>, %293, %cst_139 [1, 2] : vector<1x8x128xf32> to vector<1xf32>
    %295 = vector.shape_cast %294 : vector<1xf32> to vector<1x1x1xf32>
    %296 = vector.extract %295[0, 0, 0] : f32 from vector<1x1x1xf32>
    %297 = arith.addf %241, %296 : f32
    %c1_140 = arith.constant 1 : index
    %c2_141 = arith.constant 2 : index
    %c0_142 = arith.constant 0 : index
    %c0_143 = arith.constant 0 : index
    %298 = vector.load %arg1[%c1_140, %c2_141, %c0_142, %c0_143] : memref<2x3x16x16xf32, #tpu.memory_space<vmem>>, vector<1x1x16x16xf32>
    %299 = vector.shape_cast %298 : vector<1x1x16x16xf32> to vector<16x16xf32>
    %c1_144 = arith.constant 1 : index
    %c2_145 = arith.constant 2 : index
    %c0_146 = arith.constant 0 : index
    %c0_147 = arith.constant 0 : index
    %300 = vector.load %arg2[%c1_144, %c2_145, %c0_146, %c0_147] : memref<2x3x16x16xf32, #tpu.memory_space<vmem>>, vector<1x1x16x16xf32>
    %301 = vector.shape_cast %300 : vector<1x1x16x16xf32> to vector<16x16xf32>
    %cst_148 = arith.constant dense<0.000000e+00> : vector<16x128xf32>
    %302 = tpu.matmul %299, %0, %cst_148 {dimension_numbers = #tpu.dot_dimension_numbers<[1], [0], [0], [1], [0, 0, 1, 1], [], []>} : vector<16x16xf32>, vector<16x128xf32>, vector<16x128xf32> -> vector<16x128xf32>
    %cst_149 = arith.constant dense<0.000000e+00> : vector<16x128xf32>
    %303 = tpu.matmul %301, %0, %cst_149 {dimension_numbers = #tpu.dot_dimension_numbers<[1], [0], [0], [1], [0, 0, 1, 1], [], []>} : vector<16x16xf32>, vector<16x128xf32>, vector<16x128xf32> -> vector<16x128xf32>
    %304 = arith.mulf %299, %299 : vector<16x16xf32>
    %cst_150 = arith.constant dense<0.000000e+00> : vector<16x128xf32>
    %305 = tpu.matmul %304, %0, %cst_150 {dimension_numbers = #tpu.dot_dimension_numbers<[1], [0], [0], [1], [0, 0, 1, 1], [], []>} : vector<16x16xf32>, vector<16x128xf32>, vector<16x128xf32> -> vector<16x128xf32>
    %306 = arith.mulf %301, %301 : vector<16x16xf32>
    %cst_151 = arith.constant dense<0.000000e+00> : vector<16x128xf32>
    %307 = tpu.matmul %306, %0, %cst_151 {dimension_numbers = #tpu.dot_dimension_numbers<[1], [0], [0], [1], [0, 0, 1, 1], [], []>} : vector<16x16xf32>, vector<16x128xf32>, vector<16x128xf32> -> vector<16x128xf32>
    %308 = arith.mulf %299, %301 : vector<16x16xf32>
    %cst_152 = arith.constant dense<0.000000e+00> : vector<16x128xf32>
    %309 = tpu.matmul %308, %0, %cst_152 {dimension_numbers = #tpu.dot_dimension_numbers<[1], [0], [0], [1], [0, 0, 1, 1], [], []>} : vector<16x16xf32>, vector<16x128xf32>, vector<16x128xf32> -> vector<16x128xf32>
    %cst_153 = arith.constant dense<0.000000e+00> : vector<8x128xf32>
    %310 = tpu.matmul %1, %302, %cst_153 {dimension_numbers = #tpu.dot_dimension_numbers<[1], [0], [0], [1], [0, 0, 1, 1], [], []>} : vector<8x16xf32>, vector<16x128xf32>, vector<8x128xf32> -> vector<8x128xf32>
    %cst_154 = arith.constant dense<0.000000e+00> : vector<8x128xf32>
    %311 = tpu.matmul %1, %303, %cst_154 {dimension_numbers = #tpu.dot_dimension_numbers<[1], [0], [0], [1], [0, 0, 1, 1], [], []>} : vector<8x16xf32>, vector<16x128xf32>, vector<8x128xf32> -> vector<8x128xf32>
    %cst_155 = arith.constant dense<0.000000e+00> : vector<8x128xf32>
    %312 = tpu.matmul %1, %305, %cst_155 {dimension_numbers = #tpu.dot_dimension_numbers<[1], [0], [0], [1], [0, 0, 1, 1], [], []>} : vector<8x16xf32>, vector<16x128xf32>, vector<8x128xf32> -> vector<8x128xf32>
    %cst_156 = arith.constant dense<0.000000e+00> : vector<8x128xf32>
    %313 = tpu.matmul %1, %307, %cst_156 {dimension_numbers = #tpu.dot_dimension_numbers<[1], [0], [0], [1], [0, 0, 1, 1], [], []>} : vector<8x16xf32>, vector<16x128xf32>, vector<8x128xf32> -> vector<8x128xf32>
    %cst_157 = arith.constant dense<0.000000e+00> : vector<8x128xf32>
    %314 = tpu.matmul %1, %309, %cst_157 {dimension_numbers = #tpu.dot_dimension_numbers<[1], [0], [0], [1], [0, 0, 1, 1], [], []>} : vector<8x16xf32>, vector<16x128xf32>, vector<8x128xf32> -> vector<8x128xf32>
    %315 = arith.mulf %310, %311 : vector<8x128xf32>
    %316 = arith.mulf %310, %310 : vector<8x128xf32>
    %317 = arith.mulf %311, %311 : vector<8x128xf32>
    %318 = arith.subf %312, %316 : vector<8x128xf32>
    %319 = arith.subf %313, %317 : vector<8x128xf32>
    %320 = arith.subf %314, %315 : vector<8x128xf32>
    %321 = arith.addf %316, %317 : vector<8x128xf32>
    %cst_158 = arith.constant 6.502500e+00 : f32
    %322 = vector.broadcast %cst_158 : f32 to vector<8x128xf32>
    %323 = arith.addf %321, %322 : vector<8x128xf32>
    %324 = arith.addf %318, %319 : vector<8x128xf32>
    %cst_159 = arith.constant 5.852250e+01 : f32
    %325 = vector.broadcast %cst_159 : f32 to vector<8x128xf32>
    %326 = arith.addf %324, %325 : vector<8x128xf32>
    %327 = tpu.reciprocal %323 {approx = true} : vector<8x128xf32> -> vector<8x128xf32>
    %328 = arith.mulf %323, %327 : vector<8x128xf32>
    %cst_160 = arith.constant 2.000000e+00 : f32
    %329 = vector.broadcast %cst_160 : f32 to vector<8x128xf32>
    %330 = arith.subf %329, %328 : vector<8x128xf32>
    %331 = arith.mulf %327, %330 : vector<8x128xf32>
    %332 = tpu.reciprocal %326 {approx = true} : vector<8x128xf32> -> vector<8x128xf32>
    %333 = arith.mulf %326, %332 : vector<8x128xf32>
    %cst_161 = arith.constant 2.000000e+00 : f32
    %334 = vector.broadcast %cst_161 : f32 to vector<8x128xf32>
    %335 = arith.subf %334, %333 : vector<8x128xf32>
    %336 = arith.mulf %332, %335 : vector<8x128xf32>
    %cst_162 = arith.constant 2.000000e+00 : f32
    %337 = vector.broadcast %cst_162 : f32 to vector<8x128xf32>
    %338 = arith.mulf %337, %315 : vector<8x128xf32>
    %cst_163 = arith.constant 6.502500e+00 : f32
    %339 = vector.broadcast %cst_163 : f32 to vector<8x128xf32>
    %340 = arith.addf %338, %339 : vector<8x128xf32>
    %cst_164 = arith.constant 2.000000e+00 : f32
    %341 = vector.broadcast %cst_164 : f32 to vector<8x128xf32>
    %342 = arith.mulf %341, %320 : vector<8x128xf32>
    %cst_165 = arith.constant 5.852250e+01 : f32
    %343 = vector.broadcast %cst_165 : f32 to vector<8x128xf32>
    %344 = arith.addf %342, %343 : vector<8x128xf32>
    %345 = arith.mulf %340, %344 : vector<8x128xf32>
    %346 = arith.mulf %331, %336 : vector<8x128xf32>
    %347 = arith.mulf %345, %346 : vector<8x128xf32>
    %348 = arith.mulf %347, %10 : vector<8x128xf32>
    %349 = vector.shape_cast %348 : vector<8x128xf32> to vector<1x8x128xf32>
    %cst_166 = arith.constant dense<0.000000e+00> : vector<1xf32>
    %350 = vector.multi_reduction <add>, %349, %cst_166 [1, 2] : vector<1x8x128xf32> to vector<1xf32>
    %351 = vector.shape_cast %350 : vector<1xf32> to vector<1x1x1xf32>
    %352 = vector.extract %351[0, 0, 0] : f32 from vector<1x1x1xf32>
    %353 = arith.addf %297, %352 : f32
    %cst_167 = arith.constant 0.00925925932 : f32
    %354 = arith.mulf %353, %cst_167 : f32
    %c1_i32 = arith.constant 1 : i32
    %355 = vector.broadcast %c1_i32 : i32 to vector<8x128xi32>
    %356 = arith.cmpi eq, %11, %355 : vector<8x128xi32>
    %357 = vector.broadcast %354 : f32 to vector<8x128xf32>
    %358 = arith.select %356, %357, %185 : vector<8x128xi1>, vector<8x128xf32>
    %c0_168 = arith.constant 0 : index
    %c0_169 = arith.constant 0 : index
    %c0_170 = arith.constant 0 : index
    %359 = vector.load %arg5[%c0_168, %c0_169, %c0_170] : memref<1x8x128xf32, #tpu.memory_space<vmem>>, vector<1x8x128xf32>
    %360 = vector.shape_cast %359 : vector<1x8x128xf32> to vector<8x128xf32>
    %361 = vector.shape_cast %358 : vector<8x128xf32> to vector<1x8x128xf32>
    tpu.vector_store %arg5[%c0_168, %c0_169, %c0_170], %361 {strides = array<i32>} : memref<1x8x128xf32, #tpu.memory_space<vmem>>, vector<1x8x128xf32>,
    return
  }
  func.func @transform_0(%arg0: i32) -> (i32, i32, i32, i32) {
    %c0_i32 = arith.constant 0 : i32
    %c0_i32_0 = arith.constant 0 : i32
    %c0_i32_1 = arith.constant 0 : i32
    %c0_i32_2 = arith.constant 0 : i32
    return %arg0, %c0_i32, %c0_i32_0, %c0_i32_1 : i32, i32, i32, i32
  }
  func.func @transform_1(%arg0: i32) -> (i32, i32, i32, i32) {
    %c0_i32 = arith.constant 0 : i32
    %c0_i32_0 = arith.constant 0 : i32
    %c0_i32_1 = arith.constant 0 : i32
    %c0_i32_2 = arith.constant 0 : i32
    return %arg0, %c0_i32, %c0_i32_0, %c0_i32_1 : i32, i32, i32, i32
  }
  func.func @transform_2(%arg0: i32) -> (i32, i32) {
    %c0_i32 = arith.constant 0 : i32
    %c0_i32_0 = arith.constant 0 : i32
    %c0_i32_1 = arith.constant 0 : i32
    return %c0_i32, %c0_i32_0 : i32, i32
  }
  func.func @transform_3(%arg0: i32) -> (i32, i32) {
    %c0_i32 = arith.constant 0 : i32
    %c0_i32_0 = arith.constant 0 : i32
    %c0_i32_1 = arith.constant 0 : i32
    return %c0_i32, %c0_i32_0 : i32, i32
  }
  func.func @transform_4(%arg0: i32) -> (i32, i32, i32) {
    %c0_i32 = arith.constant 0 : i32
    %c0_i32_0 = arith.constant 0 : i32
    %c0_i32_1 = arith.constant 0 : i32
    return %arg0, %c0_i32, %c0_i32_0 : i32, i32, i32
  }
}

</mosaic_0001>

<bundles_post_ra>
// kernel: tpu_custom_call.1
= control target key start
LH: loop header
LB: loop body
LE: loop exit
PB: predicated region body
PF: predicated region fallthrough
CT: control target
= control target key end

     0   :  { %9 = vsyncpa [#allocation3], 0  ;;  %s2431_s0 = inlined_call_operand.hbm [shape: f32[2,3,16,16], index: 0, kind: input, shape index: {}]   ;;  %s2432_s1 = inlined_call_operand.hbm [shape: f32[2,3,16,16], index: 1, kind: input, shape index: {}]   ;;  %s2433_s2 = inlined_call_operand.hbm [shape: f32[16,128], index: 2, kind: input, shape index: {}]   ;;  %s2434_s3 = inlined_call_operand.hbm [shape: f32[8,16], index: 3, kind: input, shape index: {}]   ;;  %s2435_s4 = inlined_call_operand.hbm [shape: f32[1,8,128], index: 4, kind: output, shape index: {}]  }
   0x1   :  { %10 = vsyncpa [#allocation6], 0 }
   0x2   :  { %11 = vsyncpa [#allocation9], 0 }
   0x3   :  { %12 = vsyncpa [#allocation4], 0  ;;  %s30_s17 = sshll.u32 %s2432_s1, 4  ;;  %s2142_s18 = smov [#allocation5]   ;;  %s31_s17 = int_to_ptr.hbm [resolvable:$true] %s30_s17 }
   0x4   :  { %s32_s19 = sshll.u32 %s2142_s18, 4  ;;  %s17_s22 = sshll.u32 %s2431_s0, 4  ;;  %s33_s19 = int_to_ptr.vmem [resolvable:$true] %s32_s19  ;;  %s18_s22 = int_to_ptr.hbm [resolvable:$true] %s17_s22 }
   0x5   :  { %s2143_s23 = smov 128   ;;  %s2144_s24 = smov 8  }
   0x6   :  { %38 = dma.hbm_to_vmem [thread:$0]  %s31_s17, 1536, %s33_s19, [#allocation6], %s2143_s23, %s2143_s23, %s2144_s24  }
   0x7   :  { %s2145_s25 = smov [#allocation2]   ;;  %s43_s29 = sshll.u32 %s2433_s2, 4  ;;  %s44_s29 = int_to_ptr.hbm [resolvable:$true] %s43_s29 }
   0x8   :  { %s19_s26 = sshll.u32 %s2145_s25, 4  ;;  %s57_s5 = sshll.u32 %s2434_s3, 4  ;;  %s20_s26 = int_to_ptr.vmem [resolvable:$true] %s19_s26  ;;  %s58_s5 = int_to_ptr.hbm [resolvable:$true] %s57_s5 }
   0x9   :  { %25 = dma.hbm_to_vmem [thread:$0]  %s18_s22, 1536, %s20_s26, [#allocation3], %s2143_s23, %s2143_s23, %s2144_s24  }
   0xa   :  { %s2146_s6 = smov [#allocation7]   ;;  %s2147_s0 = smov [#allocation8]  }
   0xb   :  { %s45_s7 = sshll.u32 %s2146_s6, 4  ;;  %s59_s8 = sshll.u32 %s2147_s0, 4  ;;  %s46_s7 = int_to_ptr.vmem [resolvable:$true] %s45_s7  ;;  %s60_s8 = int_to_ptr.vmem [resolvable:$true] %s59_s8 }
   0xc   :  { %51 = dma.hbm_to_vmem [thread:$0]  %s44_s29, 256, %s46_s7, [#allocation6], %s2143_s23, %s2143_s23, %s2144_s24  }
   0xd   :  { %62 = dma.hbm_to_vmem [thread:$0]  %s58_s5, 128, %s60_s8, [#allocation9]  }
   0xe   :  { %2134 = dma.done.wait [#allocation3], 1536  }
   0xf   :  { %2135 = vsyncadd [#allocation3], 4294965760 }
  0x10   :  { %2136 = dma.done.wait [#allocation6], 1792  }
  0x11   :  { %2137 = vsyncadd [#allocation6], 4294965504 }
  0x12   :  { %2138 = dma.done.wait [#allocation9], 128  }
  0x13   :  { %2139 = vsyncadd [#allocation9], 4294967168  ;;  %v2187_v0 = vld [vmem:[#allocation7 + $0x8] sm:$0xff]  ;;  %v2189_v1 = vld [vmem:[#allocation7] sm:$0xff]  ;;  %vm95_vm0 = vcmask 130048   ;;  %v82_v51 = vlaneseq  ;;  %s2149_s18 = smov [#allocation10]  }
  0x14   :  { %v91_v2 = vld [vmem:[#allocation2] sm:$0xff]  ;;  %116 = vmatpush.msra.mxu0 %v2187_v0  ;;  %145 = vmatpush.msra.mxu1 %v2187_v0  ;;  %v92_v6 = vld [vmem:[#allocation2 + $0x8] sm:$0xff]  ;;  %v390_v12 = vld [vmem:[#allocation5 + $0x10] sm:$0xff]  ;;  %s1865_s19 = sshll.u32 %s2149_s18, 4  ;;  %s1867_s22 = sshll.u32 %s2435_s4, 4  ;;  %s1866_s19 = int_to_ptr.vmem [resolvable:$true] %s1865_s19  ;;  %s1868_s22 = int_to_ptr.hbm [resolvable:$true] %s1867_s22 }
  0x15   :  { %v93_v3 = vld [vmem:[#allocation5] sm:$0xff]  ;;  %176 = vmatpush.msra.mxu2 %v2187_v0  ;;  %207 = vmatpush.msra.mxu3 %v2187_v0  ;;  %v154_v4 = vmul.f32 %v91_v2, %v91_v2  ;;  %v94_v7 = vld [vmem:[#allocation5 + $0x8] sm:$0xff]  ;;  %v155_v8 = vmul.f32 %v92_v6, %v92_v6  ;;  %v391_v15 = vld [vmem:[#allocation5 + $0x18] sm:$0xff]  ;;  %v481_v28 = vmul.f32 %v390_v12, %v390_v12  ;;  %v2255_v58 = vshrl.u32 %v82_v51, 7 }
  0x16   :  { %v185_v5 = vmul.f32 %v93_v3, %v93_v3  ;;  %117 = vmatpush.msra.mxu0 %v2189_v1  ;;  %146 = vmatpush.msra.mxu1 %v2189_v1  ;;  %v186_v9 = vmul.f32 %v94_v7, %v94_v7  ;;  %v216_v10 = vmul.f32 %v93_v3, %v91_v2  ;;  %v2215_v20 = vld [vmem:[#allocation8] sm:$0xff]  ;;  %v388_v27 = vld [vmem:[#allocation2 + $0x18] sm:$0xff]  ;;  %v2247_v39 = vld [vmem:[#allocation5 + $0x20] sm:$0xff]  ;;  %v85_v59 = vand.u32 127, %v82_v51 }
  0x17   :  { %177 = vmatpush.msra.mxu2 %v2189_v1  ;;  %208 = vmatpush.msra.mxu3 %v2189_v1  ;;  %v217_v11 = vmul.f32 %v94_v7, %v92_v6  ;;  %v387_v24 = vld [vmem:[#allocation2 + $0x10] sm:$0xff]  ;;  %v451_v29 = vmul.f32 %v388_v27, %v388_v27  ;;  %v482_v31 = vmul.f32 %v391_v15, %v391_v15  ;;  %v2251_v48 = vld [vmem:[#allocation5 + $0x28] sm:$0xff]  ;;  %vm86_vm1 = vcmp.lt.s32.totalorder %v2255_v58, 6 }
  0x18   :  { %1880 = vmatmul.msk.f32.vlgmr.msra.gmra.mxu0 %vm95_vm0, %v91_v2  ;;  %1882 = vmatmul.msk.f32.vlgmr.msra.gmra.mxu1 %vm95_vm0, %v93_v3  ;;  %v450_v26 = vmul.f32 %v387_v24, %v387_v24  ;;  %v512_v30 = vmul.f32 %v390_v12, %v387_v24  ;;  %v513_v32 = vmul.f32 %v391_v15, %v388_v27  ;;  %vm87_vm2 = vcmp.lt.s32.totalorder %v85_v59, 6 }
  0x19   :  { %1884 = vmatmul.msk.f32.vlgmr.msra.gmra.mxu2 %vm95_vm0, %v154_v4  ;;  %1886 = vmatmul.msk.f32.vlgmr.msra.gmra.mxu3 %vm95_vm0, %v185_v5  ;;  %vm88_vm3 = vmand %vm86_vm1, %vm87_vm2  ;;  %vm973_vm4 = vcmp.eq.s32.totalorder %v2255_v58, 0  ;;  %vm1856_vm5 = vcmp.eq.s32.totalorder %v2255_v58, 1 }
  0x1a   :  { %238 = vmatpush.msrb.mxu0 %v2187_v0 }
  0x1c   :  { %239 = vmatpush.msrb.mxu0 %v2189_v1 }
  0x1e   :  { %441 = vmatpush.msra.mxu0 %v2187_v0 }
  0x20   :  { %442 = vmatpush.msra.mxu0 %v2189_v1  ;;  %1883 = vmatmul.msk.f32.gmra.mxu1 %vm95_vm0, %v94_v7 }
  0x21   :  { %1881 = vmatmul.msk.f32.gmra.mxu0 %vm95_vm0, %v92_v6  ;;  %1885 = vmatmul.msk.f32.gmra.mxu2 %vm95_vm0, %v155_v8 }
  0x22   :  { %1887 = vmatmul.msk.f32.gmra.mxu3 %vm95_vm0, %v186_v9 }
  0x29   :  { %1888 = vmatmul.msk.f32.vlgmr.msrb.gmra.mxu0 %vm95_vm0, %v216_v10 }
  0x31   :  { %1889 = vmatmul.msk.f32.gmra.mxu0 %vm95_vm0, %v217_v11  ;;  %v680_v11 = vld [vmem:[#allocation2 + $0x20] sm:$0xff] }
  0x39   :  { %1897 = vmatmul.msk.f32.vlgmr.msra.gmra.mxu0 %vm95_vm0, %v390_v12 }
  0x41   :  { %1898 = vmatmul.msk.f32.gmra.mxu0 %vm95_vm0, %v391_v15 }
  0x95   :  { %v119_v13 = vpop.f32.mrf.mxu0  ;;  %v148_v14 = vpop.f32.mrf.mxu1 }
  0x9c   :  { %v179_v16 = vpop.f32.mrf.mxu2  ;;  %v210_v17 = vpop.f32.mrf.mxu3 }
  0x9d   :  { %v151_v19 = vpop.f32.mrf.mxu1 }
  0x9e   :  { %v122_v18 = vpop.f32.mrf.mxu0  ;;  %284 = vmatpush.msrb.mxu2 %v151_v19  ;;  %v681_v19 = vld [vmem:[#allocation2 + $0x28] sm:$0xff] }
  0x9f   :  { %264 = vmatpush.msrb.mxu1 %v122_v18 }
  0xa0   :  { %285 = vmatpush.msrb.mxu2 %v148_v14 }
  0xa1   :  { %265 = vmatpush.msrb.mxu1 %v119_v13  ;;  %1891 = vmatmul.msk.f32.vlgmr.msrb.gmra.mxu2 %vm95_vm0, %v2215_v20  ;;  %v2148_v13 = vmov 0.0  }
  0xa2   :  { %1890 = vmatmul.msk.f32.vlgmr.msrb.gmra.mxu1 %vm95_vm0, %v2215_v20  ;;  %v2265_v14 = vsel %vm88_vm3, 1.0, %v2148_v13 }
  0xa4   :  { %v182_v21 = vpop.f32.mrf.mxu2 }
  0xa5   :  { %v213_v22 = vpop.f32.mrf.mxu3  ;;  %304 = vmatpush.msrb.mxu3 %v182_v21 }
  0xa6   :  { %324 = vmatpush.msra.mxu1 %v213_v22  ;;  %v241_v23 = vpop.f32.mrf.mxu0  ;;  %v743_v22 = vmul.f32 %v680_v11, %v680_v11 }
  0xa7   :  { %305 = vmatpush.msrb.mxu3 %v179_v16 }
  0xa8   :  { %325 = vmatpush.msra.mxu1 %v210_v17  ;;  %1892 = vmatmul.msk.f32.vlgmr.msrb.gmra.mxu3 %vm95_vm0, %v2215_v20 }
  0xa9   :  { %412 = vmatpush.msra.mxu3 %v2187_v0 }
  0xaa   :  { %472 = vmatpush.msrb.mxu1 %v2187_v0 }
  0xab   :  { %1893 = vmatmul.msk.f32.vlgmr.msra.gmra.mxu1 %vm95_vm0, %v2215_v20  ;;  %413 = vmatpush.msra.mxu3 %v2189_v1 }
  0xac   :  { %473 = vmatpush.msrb.mxu1 %v2189_v1 }
  0xad   :  { %534 = vmatpush.msrb.mxu3 %v2187_v0 }
  0xae   :  { %v244_v25 = vpop.f32.mrf.mxu0 }
  0xaf   :  { %344 = vmatpush.msra.mxu2 %v244_v25  ;;  %535 = vmatpush.msrb.mxu3 %v2189_v1  ;;  %v744_v25 = vmul.f32 %v681_v19, %v681_v19 }
  0xb0   :  { %1895 = vmatmul.msk.f32.vlgmr.msra.gmra.mxu3 %vm95_vm0, %v387_v24  ;;  %v774_v24 = vmul.f32 %v2247_v39, %v2247_v39 }
  0xb1   :  { %345 = vmatpush.msra.mxu2 %v241_v23  ;;  %734 = vmatpush.msra.mxu3 %v2187_v0  ;;  %v805_v23 = vmul.f32 %v2247_v39, %v680_v11 }
  0xb2   :  { %1894 = vmatmul.msk.f32.vlgmr.msra.gmra.mxu2 %vm95_vm0, %v2215_v20 }
  0xb3   :  { %1899 = vmatmul.msk.f32.vlgmr.msrb.gmra.mxu1 %vm95_vm0, %v450_v26  ;;  %503 = vmatpush.msrb.mxu2 %v2187_v0  ;;  %v806_v26 = vmul.f32 %v2251_v48, %v681_v19 }
  0xb4   :  { %735 = vmatpush.msra.mxu3 %v2189_v1 }
  0xb5   :  { %504 = vmatpush.msrb.mxu2 %v2189_v1 }
  0xb6   :  { %v444_v33 = vpop.f32.mrf.mxu0 }
  0xb8   :  { %1896 = vmatmul.msk.f32.gmra.mxu3 %vm95_vm0, %v388_v27  ;;  %v775_v27 = vmul.f32 %v2251_v48, %v2251_v48 }
  0xba   :  { %1901 = vmatmul.msk.f32.vlgmr.msrb.gmra.mxu2 %vm95_vm0, %v481_v28 }
  0xbb   :  { %1900 = vmatmul.msk.f32.gmra.mxu1 %vm95_vm0, %v451_v29 }
  0xbe   :  { %v447_v34 = vpop.f32.mrf.mxu0 }
  0xbf   :  { %577 = vmatpush.msra.mxu1 %v447_v34 }
  0xc0   :  { %1903 = vmatmul.msk.f32.vlgmr.msrb.gmra.mxu3 %vm95_vm0, %v512_v30 }
  0xc1   :  { %578 = vmatpush.msra.mxu1 %v444_v33 }
  0xc2   :  { %1902 = vmatmul.msk.f32.gmra.mxu2 %vm95_vm0, %v482_v31 }
  0xc3   :  { %1906 = vmatmul.msk.f32.vlgmr.msra.gmra.mxu1 %vm95_vm0, %v2215_v20 }
  0xc8   :  { %1904 = vmatmul.msk.f32.gmra.mxu3 %vm95_vm0, %v513_v32 }
  0xd0   :  { %1912 = vmatmul.msk.f32.vlgmr.msra.gmra.mxu3 %vm95_vm0, %v2247_v39 }
  0xd8   :  { %1913 = vmatmul.msk.f32.gmra.mxu3 %vm95_vm0, %v2251_v48 }
 0x11f   :  { %v267_v35 = vpop.f32.mrf.mxu1 }
 0x120   :  { %v351_v36 = vmul.f32 %v267_v35, %v267_v35 }
 0x124   :  { %v287_v37 = vpop.f32.mrf.mxu2 }
 0x125   :  { %v352_v38 = vmul.f32 %v287_v37, %v287_v37  ;;  %v350_v52 = vmul.f32 %v287_v37, %v267_v35  ;;  %v2295_v35 = vld [vmem:[#allocation5 + $0x30] sm:$0xff] }
 0x127   :  { %v356_v41 = vadd.f32 %v352_v38, %v351_v36  ;;  %v368_v63 = vmul.f32 2.0, %v350_v52 }
 0x128   :  { %v327_v40 = vpop.f32.mrf.mxu1 }
 0x129   :  { %v357_v42 = vadd.f32 6.5025, %v356_v41  ;;  %v354_v43 = vsub.f32 %v327_v40, %v352_v38  ;;  %v369_v7 = vadd.f32 6.5025, %v368_v63 }
 0x12b   :  { %v307_v44 = vpop.f32.mrf.mxu3  ;;  %1990 = vrcp.f32 %v357_v42 }
 0x12c   :  { %v353_v45 = vsub.f32 %v307_v44, %v351_v36  ;;  %v2299_v44 = vld [vmem:[#allocation5 + $0x38] sm:$0xff] }
 0x12e   :  { %v358_v46 = vadd.f32 %v354_v43, %v353_v45 }
 0x130   :  { %v475_v47 = vpop.f32.mrf.mxu1  ;;  %v359_v49 = vadd.f32 58.5225, %v358_v46 }
 0x131   :  { %v1991_v50 = vpop.eup %1990 }
 0x132   :  { %1992 = vrcp.f32 %v359_v49  ;;  %v361_v55 = vmul.f32 %v1991_v50, %v357_v42 }
 0x133   :  { %v415_v53 = vpop.f32.mrf.mxu3 }
 0x134   :  { %v362_v62 = vsub.f32 2.0, %v361_v55 }
 0x135   :  { %v347_v54 = vpop.f32.mrf.mxu2 }
 0x136   :  { %v355_v56 = vsub.f32 %v347_v54, %v350_v52  ;;  %v363_v8 = vmul.f32 %v1991_v50, %v362_v62 }
 0x138   :  { %v478_v57 = vpop.f32.mrf.mxu1  ;;  %v370_v60 = vmul.f32 2.0, %v355_v56  ;;  %v1993_v61 = vpop.eup %1992 }
 0x139   :  { %597 = vmatpush.msra.mxu2 %v478_v57  ;;  %v365_v2 = vmul.f32 %v1993_v61, %v359_v49 }
 0x13a   :  { %v371_v4 = vadd.f32 58.5225, %v370_v60 }
 0x13b   :  { %598 = vmatpush.msra.mxu2 %v475_v47  ;;  %v366_v3 = vsub.f32 2.0, %v365_v2  ;;  %v418_v5 = vpop.f32.mrf.mxu3 }
 0x13c   :  { %1907 = vmatmul.msk.f32.vlgmr.msra.gmra.mxu2 %vm95_vm0, %v2215_v20  ;;  %557 = vmatpush.msrb.mxu0 %v418_v5  ;;  %v372_v10 = vmul.f32 %v371_v4, %v369_v7 }
 0x13d   :  { %705 = vmatpush.msrb.mxu2 %v2187_v0  ;;  %v506_v6 = vpop.f32.mrf.mxu2  ;;  %v367_v9 = vmul.f32 %v1993_v61, %v366_v3 }
 0x13e   :  { %558 = vmatpush.msrb.mxu0 %v415_v53 }
 0x13f   :  { %706 = vmatpush.msrb.mxu2 %v2189_v1  ;;  %1905 = vmatmul.msk.f32.vlgmr.msrb.gmra.mxu0 %vm95_vm0, %v2215_v20  ;;  %v373_v12 = vmul.f32 %v367_v9, %v363_v8 }
 0x140   :  { %v580_v31 = vpop.f32.mrf.mxu1 }
 0x141   :  { %827 = vmatpush.msra.mxu2 %v2187_v0  ;;  %v374_v15 = vmul.f32 %v373_v12, %v372_v10  ;;  %v645_v34 = vmul.f32 %v580_v31, %v580_v31 }
 0x143   :  { %828 = vmatpush.msra.mxu2 %v2189_v1  ;;  %v537_v16 = vpop.f32.mrf.mxu3  ;;  %v375_v17 = vmul.f32 %v2265_v14, %v374_v15 }
 0x144   :  { %1910 = vmatmul.msk.f32.vlgmr.msrb.gmra.mxu2 %vm95_vm0, %v680_v11 }
 0x145   :  { %1031 = vmatpush.msrb.mxu2 %v2187_v0  ;;  %v509_v18 = vpop.f32.mrf.mxu2  ;;  %376 = vadd.xlane.f32.xlu0 %v375_v17 }
 0x146   :  { %617 = vmatpush.msra.mxu0 %v509_v18  ;;  %v977_v18 = vld [vmem:[#allocation2 + $0x30] sm:$0xff] }
 0x147   :  { %1032 = vmatpush.msrb.mxu2 %v2189_v1 }
 0x148   :  { %618 = vmatpush.msra.mxu0 %v506_v6 }
 0x149   :  { %1908 = vmatmul.msk.f32.vlgmr.msra.gmra.mxu0 %vm95_vm0, %v2215_v20 }
 0x14a   :  { %765 = vmatpush.msrb.mxu0 %v2187_v0 }
 0x14b   :  { %v540_v21 = vpop.f32.mrf.mxu3 }
 0x14c   :  { %1911 = vmatmul.msk.f32.gmra.mxu2 %vm95_vm0, %v681_v19  ;;  %766 = vmatpush.msrb.mxu0 %v2189_v1  ;;  %v1040_v19 = vmul.f32 %v977_v18, %v977_v18 }
 0x14d   :  { %637 = vmatpush.msrb.mxu1 %v540_v21  ;;  %v1071_v21 = vmul.f32 %v2295_v35, %v2295_v35 }
 0x14f   :  { %638 = vmatpush.msrb.mxu1 %v537_v16 }
 0x150   :  { %1909 = vmatmul.msk.f32.vlgmr.msrb.gmra.mxu1 %vm95_vm0, %v2215_v20 }
 0x151   :  { %1914 = vmatmul.msk.f32.vlgmr.msrb.gmra.mxu0 %vm95_vm0, %v743_v22  ;;  %796 = vmatpush.msra.mxu1 %v2187_v0  ;;  %v978_v22 = vld [vmem:[#allocation2 + $0x38] sm:$0xff] }
 0x153   :  { %797 = vmatpush.msra.mxu1 %v2189_v1  ;;  %v737_v28 = vpop.f32.mrf.mxu3 }
 0x154   :  { %1918 = vmatmul.msk.f32.vlgmr.msra.gmra.mxu2 %vm95_vm0, %v805_v23  ;;  %v1041_v23 = vmul.f32 %v978_v22, %v978_v22 }
 0x158   :  { %1916 = vmatmul.msk.f32.vlgmr.msra.gmra.mxu1 %vm95_vm0, %v774_v24  ;;  %v1102_v24 = vmul.f32 %v2295_v35, %v977_v18 }
 0x159   :  { %1915 = vmatmul.msk.f32.gmra.mxu0 %vm95_vm0, %v744_v25  ;;  %v1072_v25 = vmul.f32 %v2299_v44, %v2299_v44 }
 0x15b   :  { %v740_v29 = vpop.f32.mrf.mxu3 }
 0x15c   :  { %1919 = vmatmul.msk.f32.gmra.mxu2 %vm95_vm0, %v806_v26  ;;  %870 = vmatpush.msra.mxu0 %v740_v29  ;;  %v1103_v26 = vmul.f32 %v2299_v44, %v978_v22 }
 0x15e   :  { %871 = vmatpush.msra.mxu0 %v737_v28 }
 0x160   :  { %1917 = vmatmul.msk.f32.gmra.mxu1 %vm95_vm0, %v775_v27 }
 0x161   :  { %1921 = vmatmul.msk.f32.vlgmr.msra.gmra.mxu0 %vm95_vm0, %v2215_v20 }
 0x164   :  { %1927 = vmatmul.msk.f32.vlgmr.msrb.gmra.mxu2 %vm95_vm0, %v2295_v35 }
 0x16c   :  { %1928 = vmatmul.msk.f32.gmra.mxu2 %vm95_vm0, %v2299_v44 }
 0x1b8   :  { %v377_v30 = vpop.xlane.xlu0 %376 }
 0x1b9   :  { %v378_v32 = vrot.slane %v377_v30, 4 }
 0x1bb   :  { %v379_v33 = vadd.f32 %v378_v32, %v377_v30 }
 0x1bc   :  { %v560_v36 = vpop.f32.mrf.mxu0 }
 0x1bd   :  { %v380_v37 = vrot.slane %v379_v33, 2  ;;  %v644_v38 = vmul.f32 %v560_v36, %v560_v36  ;;  %v643_v52 = vmul.f32 %v580_v31, %v560_v36 }
 0x1bf   :  { %v600_v39 = vpop.f32.mrf.mxu2  ;;  %v649_v40 = vadd.f32 %v645_v34, %v644_v38  ;;  %v381_v41 = vadd.f32 %v380_v37, %v379_v33  ;;  %v661_v63 = vmul.f32 2.0, %v643_v52 }
 0x1c0   :  { %v646_v48 = vsub.f32 %v600_v39, %v644_v38  ;;  %v2338_v39 = vld [vmem:[#allocation5 + $0x40] sm:$0xff] }
 0x1c1   :  { %v382_v42 = vrot.slane %v381_v41, 1  ;;  %v650_v43 = vadd.f32 6.5025, %v649_v40  ;;  %v662_v8 = vadd.f32 6.5025, %v661_v63 }
 0x1c3   :  { %v383_v45 = vadd.f32 %v382_v42, %v381_v41  ;;  %1994 = vrcp.f32 %v650_v43 }
 0x1c5   :  { %1970 = vpush %v383_v45  ;;  %v2342_v45 = vld [vmem:[#allocation5 + $0x48] sm:$0xff] }
 0x1c6   :  { %v620_v46 = vpop.f32.mrf.mxu0 }
 0x1c7   :  { %v708_v47 = vpop.f32.mrf.mxu2  ;;  %v647_v49 = vsub.f32 %v620_v46, %v645_v34 }
 0x1c9   :  { %v651_v50 = vadd.f32 %v647_v49, %v646_v48  ;;  %v1995_v53 = vpop.eup %1994 }
 0x1ca   :  { %v654_v59 = vmul.f32 %v1995_v53, %v650_v43 }
 0x1cb   :  { %v652_v51 = vadd.f32 58.5225, %v651_v50 }
 0x1cc   :  { %v655_v62 = vsub.f32 2.0, %v654_v59 }
 0x1cd   :  { %1996 = vrcp.f32 %v652_v51  ;;  %v640_v54 = vpop.f32.mrf.mxu1 }
 0x1ce   :  { %v648_v55 = vsub.f32 %v640_v54, %v643_v52  ;;  %v768_v57 = vpop.f32.mrf.mxu0  ;;  %v656_v9 = vmul.f32 %v1995_v53, %v655_v62 }
 0x1cf   :  { %v711_v56 = vpop.f32.mrf.mxu2 }
 0x1d0   :  { %850 = vmatpush.msrb.mxu3 %v711_v56  ;;  %v663_v60 = vmul.f32 2.0, %v648_v55 }
 0x1d2   :  { %851 = vmatpush.msrb.mxu3 %v708_v47  ;;  %v664_v5 = vadd.f32 58.5225, %v663_v60 }
 0x1d3   :  { %1920 = vmatmul.msk.f32.vlgmr.msrb.gmra.mxu3 %vm95_vm0, %v2215_v20  ;;  %v1997_v61 = vpop.eup %1996 }
 0x1d4   :  { %v658_v2 = vmul.f32 %v1997_v61, %v652_v51  ;;  %v665_v11 = vmul.f32 %v664_v5, %v662_v8  ;;  %v1270_v8 = vld [vmem:[#allocation2 + $0x40] sm:$0xff] }
 0x1d5   :  { %v799_v3 = vpop.f32.mrf.mxu1 }
 0x1d6   :  { %v659_v4 = vsub.f32 2.0, %v658_v2  ;;  %v771_v6 = vpop.f32.mrf.mxu0 }
 0x1d7   :  { %v830_v7 = vpop.f32.mrf.mxu2  ;;  %890 = vmatpush.msrb.mxu1 %v771_v6 }
 0x1d8   :  { %v660_v10 = vmul.f32 %v1997_v61, %v659_v4 }
 0x1d9   :  { %891 = vmatpush.msrb.mxu1 %v768_v57 }
 0x1da   :  { %1922 = vmatmul.msk.f32.vlgmr.msrb.gmra.mxu1 %vm95_vm0, %v2215_v20  ;;  %v666_v12 = vmul.f32 %v660_v10, %v656_v9 }
 0x1db   :  { %1002 = vmatpush.msra.mxu1 %v2187_v0 }
 0x1dc   :  { %v667_v13 = vmul.f32 %v666_v12, %v665_v11 }
 0x1dd   :  { %v802_v15 = vpop.f32.mrf.mxu1  ;;  %1003 = vmatpush.msra.mxu1 %v2189_v1 }
 0x1de   :  { %910 = vmatpush.msra.mxu3 %v802_v15  ;;  %v668_v17 = vmul.f32 %v2265_v14, %v667_v13  ;;  %v873_v33 = vpop.f32.mrf.mxu0  ;;  %v1333_v13 = vmul.f32 %v1270_v8, %v1270_v8 }
 0x1df   :  { %v833_v16 = vpop.f32.mrf.mxu2  ;;  %1124 = vmatpush.msrb.mxu1 %v2187_v0  ;;  %v938_v37 = vmul.f32 %v873_v33, %v873_v33 }
 0x1e0   :  { %930 = vmatpush.msrb.mxu0 %v833_v16  ;;  %911 = vmatpush.msra.mxu3 %v799_v3 }
 0x1e1   :  { %669 = vadd.xlane.f32.xlu0 %v668_v17  ;;  %1923 = vmatmul.msk.f32.vlgmr.msra.gmra.mxu3 %vm95_vm0, %v2215_v20 }
 0x1e2   :  { %931 = vmatpush.msrb.mxu0 %v830_v7  ;;  %1925 = vmatmul.msk.f32.vlgmr.msra.gmra.mxu1 %vm95_vm0, %v977_v18 }
 0x1e3   :  { %1924 = vmatmul.msk.f32.vlgmr.msrb.gmra.mxu0 %vm95_vm0, %v2215_v20  ;;  %1062 = vmatpush.msrb.mxu3 %v2187_v0 }
 0x1e4   :  { %1093 = vmatpush.msra.mxu0 %v2187_v0  ;;  %1125 = vmatpush.msrb.mxu1 %v2189_v1 }
 0x1e5   :  { %1063 = vmatpush.msrb.mxu3 %v2189_v1 }
 0x1e6   :  { %1094 = vmatpush.msra.mxu0 %v2189_v1  ;;  %1324 = vmatpush.msra.mxu1 %v2187_v0 }
 0x1e7   :  { %v1034_v27 = vpop.f32.mrf.mxu2 }
 0x1e8   :  { %1325 = vmatpush.msra.mxu1 %v2189_v1 }
 0x1e9   :  { %1929 = vmatmul.msk.f32.vlgmr.msrb.gmra.mxu3 %vm95_vm0, %v1040_v19  ;;  %v1271_v19 = vld [vmem:[#allocation2 + $0x48] sm:$0xff] }
 0x1ea   :  { %1926 = vmatmul.msk.f32.gmra.mxu1 %vm95_vm0, %v978_v22  ;;  %v1334_v22 = vmul.f32 %v1271_v19, %v1271_v19 }
 0x1eb   :  { %1931 = vmatmul.msk.f32.vlgmr.msra.gmra.mxu0 %vm95_vm0, %v1071_v21  ;;  %v1364_v21 = vmul.f32 %v2338_v39, %v2338_v39 }
 0x1ef   :  { %v1037_v28 = vpop.f32.mrf.mxu2 }
 0x1f0   :  { %1167 = vmatpush.msra.mxu3 %v1037_v28 }
 0x1f1   :  { %1930 = vmatmul.msk.f32.gmra.mxu3 %vm95_vm0, %v1041_v23  ;;  %v1365_v23 = vmul.f32 %v2342_v45, %v2342_v45 }
 0x1f2   :  { %1933 = vmatmul.msk.f32.vlgmr.msrb.gmra.mxu1 %vm95_vm0, %v1102_v24  ;;  %1168 = vmatpush.msra.mxu3 %v1034_v27  ;;  %v1395_v24 = vmul.f32 %v2338_v39, %v1270_v8 }
 0x1f3   :  { %1932 = vmatmul.msk.f32.gmra.mxu0 %vm95_vm0, %v1072_v25  ;;  %v1396_v25 = vmul.f32 %v2342_v45, %v1271_v19 }
 0x1f6   :  { %s1971_s2 = spop %1970 }
 0x1f9   :  { %1936 = vmatmul.msk.f32.vlgmr.msra.gmra.mxu3 %vm95_vm0, %v2215_v20 }
 0x1fa   :  { %1934 = vmatmul.msk.f32.gmra.mxu1 %vm95_vm0, %v1103_v26 }
 0x202   :  { %1942 = vmatmul.msk.f32.vlgmr.msra.gmra.mxu1 %vm95_vm0, %v2338_v39 }
 0x20a   :  { %1943 = vmatmul.msk.f32.gmra.mxu1 %vm95_vm0, %v2342_v45 }
 0x254   :  { %v670_v29 = vpop.xlane.xlu0 %669 }
 0x255   :  { %v671_v30 = vrot.slane %v670_v29, 4 }
 0x256   :  { %v853_v32 = vpop.f32.mrf.mxu3 }
 0x257   :  { %v672_v31 = vadd.f32 %v671_v30, %v670_v29  ;;  %v893_v34 = vpop.f32.mrf.mxu1  ;;  %v937_v36 = vmul.f32 %v853_v32, %v853_v32  ;;  %v936_v54 = vmul.f32 %v873_v33, %v853_v32 }
 0x259   :  { %v673_v35 = vrot.slane %v672_v31, 2  ;;  %v942_v41 = vadd.f32 %v938_v37, %v937_v36  ;;  %v939_v48 = vsub.f32 %v893_v34, %v937_v36  ;;  %v954_v3 = vmul.f32 2.0, %v936_v54 }
 0x25b   :  { %v674_v38 = vadd.f32 %v673_v35, %v672_v31  ;;  %v943_v46 = vadd.f32 6.5025, %v942_v41  ;;  %v955_v9 = vadd.f32 6.5025, %v954_v3 }
 0x25d   :  { %v675_v40 = vrot.slane %v674_v38, 1  ;;  %1998 = vrcp.f32 %v943_v46 }
 0x25f   :  { %v676_v42 = vadd.f32 %v675_v40, %v674_v38  ;;  %v1005_v44 = vpop.f32.mrf.mxu1 }
 0x260   :  { %v933_v43 = vpop.f32.mrf.mxu0 }
 0x261   :  { %1972 = vpush %v676_v42  ;;  %v941_v56 = vsub.f32 %v933_v43, %v936_v54  ;;  %v2381_v43 = vld [vmem:[#allocation5 + $0x50] sm:$0xff] }
 0x263   :  { %v1999_v55 = vpop.eup %1998  ;;  %v956_v62 = vmul.f32 2.0, %v941_v56 }
 0x264   :  { %v913_v47 = vpop.f32.mrf.mxu3  ;;  %v947_v59 = vmul.f32 %v1999_v55, %v943_v46 }
 0x265   :  { %v940_v49 = vsub.f32 %v913_v47, %v938_v37  ;;  %v957_v5 = vadd.f32 58.5225, %v956_v62 }
 0x266   :  { %v948_v2 = vsub.f32 2.0, %v947_v59 }
 0x267   :  { %v944_v50 = vadd.f32 %v940_v49, %v939_v48  ;;  %v1008_v51 = vpop.f32.mrf.mxu1  ;;  %v958_v15 = vmul.f32 %v957_v5, %v955_v9 }
 0x268   :  { %v1096_v52 = vpop.f32.mrf.mxu0  ;;  %1147 = vmatpush.msra.mxu2 %v1008_v51  ;;  %v949_v10 = vmul.f32 %v1999_v55, %v948_v2  ;;  %v1567_v55 = vld [vmem:[#allocation5 + $0x58] sm:$0xff] }
 0x269   :  { %v945_v53 = vadd.f32 58.5225, %v944_v50 }
 0x26a   :  { %1148 = vmatpush.msra.mxu2 %v1005_v44 }
 0x26b   :  { %2000 = vrcp.f32 %v945_v53  ;;  %1935 = vmatmul.msk.f32.vlgmr.msra.gmra.mxu2 %vm95_vm0, %v2215_v20 }
 0x26c   :  { %v1065_v57 = vpop.f32.mrf.mxu3 }
 0x26f   :  { %v1127_v61 = vpop.f32.mrf.mxu1 }
 0x270   :  { %v1099_v60 = vpop.f32.mrf.mxu0 }
 0x271   :  { %1207 = vmatpush.msrb.mxu2 %v1099_v60  ;;  %v2001_v63 = vpop.eup %2000 }
 0x272   :  { %v951_v4 = vmul.f32 %v2001_v63, %v945_v53 }
 0x273   :  { %1208 = vmatpush.msrb.mxu2 %v1096_v52 }
 0x274   :  { %1938 = vmatmul.msk.f32.vlgmr.msrb.gmra.mxu2 %vm95_vm0, %v2215_v20  ;;  %v952_v6 = vsub.f32 2.0, %v951_v4  ;;  %v1068_v7 = vpop.f32.mrf.mxu3 }
 0x275   :  { %1355 = vmatpush.msra.mxu2 %v2187_v0  ;;  %1187 = vmatpush.msrb.mxu0 %v1068_v7 }
 0x276   :  { %v953_v11 = vmul.f32 %v2001_v63, %v952_v6 }
 0x277   :  { %1356 = vmatpush.msra.mxu2 %v2189_v1  ;;  %1188 = vmatpush.msrb.mxu0 %v1065_v57  ;;  %v1130_v12 = vpop.f32.mrf.mxu1 }
 0x278   :  { %1937 = vmatmul.msk.f32.vlgmr.msrb.gmra.mxu0 %vm95_vm0, %v2215_v20  ;;  %1227 = vmatpush.msrb.mxu3 %v1130_v12  ;;  %v959_v16 = vmul.f32 %v953_v11, %v949_v10 }
 0x279   :  { %1295 = vmatpush.msra.mxu0 %v2187_v0 }
 0x27a   :  { %1228 = vmatpush.msrb.mxu3 %v1127_v61  ;;  %v960_v17 = vmul.f32 %v959_v16, %v958_v15  ;;  %v1563_v15 = vld [vmem:[#allocation2 + $0x50] sm:$0xff] }
 0x27b   :  { %1939 = vmatmul.msk.f32.vlgmr.msrb.gmra.mxu3 %vm95_vm0, %v2215_v20  ;;  %1296 = vmatpush.msra.mxu0 %v2189_v1 }
 0x27c   :  { %1944 = vmatmul.msk.f32.vlgmr.msra.gmra.mxu2 %vm95_vm0, %v1333_v13  ;;  %v961_v18 = vmul.f32 %v2265_v14, %v960_v17  ;;  %1386 = vmatpush.msra.mxu3 %v2187_v0  ;;  %v1170_v28 = vpop.f32.mrf.mxu3  ;;  %v1626_v17 = vmul.f32 %v1563_v15, %v1563_v15 }
 0x27d   :  { %1417 = vmatpush.msrb.mxu0 %v2187_v0  ;;  %v1235_v29 = vmul.f32 %v1170_v28, %v1170_v28 }
 0x27e   :  { %962 = vadd.xlane.f32.xlu1 %v961_v18  ;;  %1387 = vmatpush.msra.mxu3 %v2189_v1  ;;  %v1564_v18 = vld [vmem:[#allocation2 + $0x58] sm:$0xff] }
 0x27f   :  { %1418 = vmatpush.msrb.mxu0 %v2189_v1  ;;  %v1327_v26 = vpop.f32.mrf.mxu1 }
 0x280   :  { %1940 = vmatmul.msk.f32.vlgmr.msra.gmra.mxu0 %vm95_vm0, %v1270_v8 }
 0x281   :  { %1617 = vmatpush.msra.mxu0 %v2187_v0 }
 0x283   :  { %1946 = vmatmul.msk.f32.vlgmr.msra.gmra.mxu3 %vm95_vm0, %v1364_v21  ;;  %1618 = vmatpush.msra.mxu0 %v2189_v1  ;;  %v1688_v21 = vmul.f32 %v2381_v43, %v1563_v15 }
 0x284   :  { %1945 = vmatmul.msk.f32.gmra.mxu2 %vm95_vm0, %v1334_v22  ;;  %v1627_v22 = vmul.f32 %v1564_v18, %v1564_v18 }
 0x287   :  { %v1330_v27 = vpop.f32.mrf.mxu1 }
 0x288   :  { %1941 = vmatmul.msk.f32.gmra.mxu0 %vm95_vm0, %v1271_v19  ;;  %1460 = vmatpush.msrb.mxu2 %v1330_v27  ;;  %v1657_v19 = vmul.f32 %v2381_v43, %v2381_v43 }
 0x28a   :  { %1461 = vmatpush.msrb.mxu2 %v1327_v26 }
 0x28b   :  { %1947 = vmatmul.msk.f32.gmra.mxu3 %vm95_vm0, %v1365_v23  ;;  %v1658_v23 = vmul.f32 %v1567_v55, %v1567_v55 }
 0x28c   :  { %1951 = vmatmul.msk.f32.vlgmr.msrb.gmra.mxu2 %vm95_vm0, %v2215_v20 }
 0x290   :  { %1948 = vmatmul.msk.f32.vlgmr.msrb.gmra.mxu0 %vm95_vm0, %v1395_v24  ;;  %v1689_v24 = vmul.f32 %v1567_v55, %v1564_v18 }
 0x292   :  { %s1973_s3 = spop %1972 }
 0x293   :  { %s678_s10 = sadd.f32 %s1973_s3, %s1971_s2 }
 0x298   :  { %1949 = vmatmul.msk.f32.gmra.mxu0 %vm95_vm0, %v1396_v25 }
 0x2a0   :  { %1957 = vmatmul.msk.f32.vlgmr.msra.gmra.mxu0 %vm95_vm0, %v2381_v43 }
 0x2a8   :  { %1958 = vmatmul.msk.f32.gmra.mxu0 %vm95_vm0, %v1567_v55 }
 0x2ee   :  { %v1150_v30 = vpop.f32.mrf.mxu2 }
 0x2ef   :  { %v1234_v31 = vmul.f32 %v1150_v30, %v1150_v30  ;;  %v1233_v49 = vmul.f32 %v1170_v28, %v1150_v30 }
 0x2f1   :  { %v1239_v32 = vadd.f32 %v1235_v29, %v1234_v31  ;;  %v963_v33 = vpop.xlane.xlu1 %962  ;;  %v1251_v60 = vmul.f32 2.0, %v1233_v49 }
 0x2f2   :  { %v964_v34 = vrot.slane %v963_v33, 4 }
 0x2f3   :  { %v1240_v35 = vadd.f32 6.5025, %v1239_v32  ;;  %v1252_v5 = vadd.f32 6.5025, %v1251_v60 }
 0x2f4   :  { %v965_v36 = vadd.f32 %v964_v34, %v963_v33 }
 0x2f5   :  { %v1190_v37 = vpop.f32.mrf.mxu0  ;;  %2002 = vrcp.f32 %v1240_v35 }
 0x2f6   :  { %v966_v38 = vrot.slane %v965_v36, 2  ;;  %v1236_v40 = vsub.f32 %v1190_v37, %v1234_v31 }
 0x2f7   :  { %v1210_v39 = vpop.f32.mrf.mxu2 }
 0x2f8   :  { %v1237_v41 = vsub.f32 %v1210_v39, %v1235_v29  ;;  %v967_v42 = vadd.f32 %v966_v38, %v965_v36 }
 0x2fa   :  { %v1241_v44 = vadd.f32 %v1237_v41, %v1236_v40  ;;  %v968_v45 = vrot.slane %v967_v42, 1 }
 0x2fb   :  { %v2003_v48 = vpop.eup %2002 }
 0x2fc   :  { %v1242_v46 = vadd.f32 58.5225, %v1241_v44  ;;  %v969_v47 = vadd.f32 %v968_v45, %v967_v42  ;;  %v1244_v54 = vmul.f32 %v2003_v48, %v1240_v35 }
 0x2fd   :  { %v1298_v50 = vpop.f32.mrf.mxu0 }
 0x2fe   :  { %2004 = vrcp.f32 %v1242_v46  ;;  %1974 = vpush %v969_v47  ;;  %v1230_v51 = vpop.f32.mrf.mxu3  ;;  %v1245_v59 = vsub.f32 2.0, %v1244_v54 }
 0x2ff   :  { %v1358_v52 = vpop.f32.mrf.mxu2  ;;  %v1238_v53 = vsub.f32 %v1230_v51, %v1233_v49 }
 0x300   :  { %v1246_v6 = vmul.f32 %v2003_v48, %v1245_v59 }
 0x301   :  { %v1253_v56 = vmul.f32 2.0, %v1238_v53 }
 0x303   :  { %v1254_v2 = vadd.f32 58.5225, %v1253_v56 }
 0x304   :  { %v2005_v57 = vpop.eup %2004 }
 0x305   :  { %v1248_v61 = vmul.f32 %v2005_v57, %v1242_v46  ;;  %v1301_v62 = vpop.f32.mrf.mxu0  ;;  %v1255_v8 = vmul.f32 %v1254_v2, %v1252_v5 }
 0x306   :  { %1440 = vmatpush.msrb.mxu1 %v1301_v62  ;;  %v1389_v4 = vpop.f32.mrf.mxu3 }
 0x307   :  { %v1249_v63 = vsub.f32 2.0, %v1248_v61  ;;  %v1361_v3 = vpop.f32.mrf.mxu2 }
 0x308   :  { %1480 = vmatpush.msrb.mxu3 %v1361_v3  ;;  %1441 = vmatpush.msrb.mxu1 %v1298_v50 }
 0x309   :  { %v1250_v7 = vmul.f32 %v2005_v57, %v1249_v63  ;;  %1950 = vmatmul.msk.f32.vlgmr.msrb.gmra.mxu1 %vm95_vm0, %v2215_v20 }
 0x30a   :  { %1481 = vmatpush.msrb.mxu3 %v1358_v52 }
 0x30b   :  { %1952 = vmatmul.msk.f32.vlgmr.msrb.gmra.mxu3 %vm95_vm0, %v2215_v20  ;;  %v1256_v9 = vmul.f32 %v1250_v7, %v1246_v6 }
 0x30c   :  { %1588 = vmatpush.msra.mxu3 %v2187_v0 }
 0x30d   :  { %v1257_v10 = vmul.f32 %v1256_v9, %v1255_v8  ;;  %v1420_v11 = vpop.f32.mrf.mxu0 }
 0x30e   :  { %1589 = vmatpush.msra.mxu3 %v2189_v1  ;;  %v1392_v12 = vpop.f32.mrf.mxu3 }
 0x30f   :  { %v1258_v13 = vmul.f32 %v2265_v14, %v1257_v10  ;;  %1500 = vmatpush.msra.mxu1 %v1392_v12 }
 0x310   :  { %1710 = vmatpush.msrb.mxu3 %v2187_v0 }
 0x311   :  { %1259 = vadd.xlane.f32.xlu1 %v1258_v13  ;;  %1501 = vmatpush.msra.mxu1 %v1389_v4 }
 0x312   :  { %1711 = vmatpush.msrb.mxu3 %v2189_v1  ;;  %1953 = vmatmul.msk.f32.vlgmr.msra.gmra.mxu1 %vm95_vm0, %v2215_v20 }
 0x313   :  { %1955 = vmatmul.msk.f32.vlgmr.msra.gmra.mxu3 %vm95_vm0, %v1563_v15  ;;  %1648 = vmatpush.msrb.mxu1 %v2187_v0 }
 0x315   :  { %v1423_v16 = vpop.f32.mrf.mxu0  ;;  %1649 = vmatpush.msrb.mxu1 %v2189_v1 }
 0x316   :  { %1520 = vmatpush.msra.mxu2 %v1423_v16 }
 0x318   :  { %1521 = vmatpush.msra.mxu2 %v1420_v11 }
 0x319   :  { %1954 = vmatmul.msk.f32.vlgmr.msra.gmra.mxu2 %vm95_vm0, %v2215_v20 }
 0x31a   :  { %1959 = vmatmul.msk.f32.vlgmr.msrb.gmra.mxu1 %vm95_vm0, %v1626_v17  ;;  %1679 = vmatpush.msrb.mxu2 %v2187_v0 }
 0x31b   :  { %1956 = vmatmul.msk.f32.gmra.mxu3 %vm95_vm0, %v1564_v18 }
 0x31c   :  { %1680 = vmatpush.msrb.mxu2 %v2189_v1  ;;  %v1463_v1 = vpop.f32.mrf.mxu2 }
 0x31d   :  { %v1620_v0 = vpop.f32.mrf.mxu0  ;;  %v1528_v28 = vmul.f32 %v1463_v1, %v1463_v1 }
 0x321   :  { %1961 = vmatmul.msk.f32.vlgmr.msrb.gmra.mxu2 %vm95_vm0, %v1657_v19 }
 0x322   :  { %1960 = vmatmul.msk.f32.gmra.mxu1 %vm95_vm0, %v1627_v22 }
 0x323   :  { %1963 = vmatmul.msk.f32.vlgmr.msrb.gmra.mxu3 %vm95_vm0, %v1688_v21 }
 0x325   :  { %v1623_v25 = vpop.f32.mrf.mxu0 }
 0x326   :  { %1753 = vmatpush.msra.mxu1 %v1623_v25 }
 0x328   :  { %1754 = vmatpush.msra.mxu1 %v1620_v0 }
 0x329   :  { %1962 = vmatmul.msk.f32.gmra.mxu2 %vm95_vm0, %v1658_v23 }
 0x32a   :  { %1966 = vmatmul.msk.f32.vlgmr.msra.gmra.mxu1 %vm95_vm0, %v2215_v20 }
 0x32b   :  { %1964 = vmatmul.msk.f32.gmra.mxu3 %vm95_vm0, %v1689_v24 }
 0x32f   :  { %s1975_s9 = spop %1974 }
 0x330   :  { %s971_s11 = sadd.f32 %s1975_s9, %s678_s10 }
 0x332   :  { %s972_s14 = smul.f32 0.009259259, %s971_s11 }
 0x384   :  { %v1260_v26 = vpop.xlane.xlu1 %1259 }
 0x385   :  { %v1261_v27 = vrot.slane %v1260_v26, 4 }
 0x386   :  { %v1443_v30 = vpop.f32.mrf.mxu1 }
 0x387   :  { %v1262_v29 = vadd.f32 %v1261_v27, %v1260_v26  ;;  %v1527_v31 = vmul.f32 %v1443_v30, %v1443_v30  ;;  %v1526_v47 = vmul.f32 %v1463_v1, %v1443_v30 }
 0x389   :  { %v1263_v32 = vrot.slane %v1262_v29, 2  ;;  %v1532_v33 = vadd.f32 %v1528_v28, %v1527_v31  ;;  %v1544_v52 = vmul.f32 2.0, %v1526_v47 }
 0x38b   :  { %v1264_v34 = vadd.f32 %v1263_v32, %v1262_v29  ;;  %v1533_v35 = vadd.f32 6.5025, %v1532_v33  ;;  %v1545_v60 = vadd.f32 6.5025, %v1544_v52 }
 0x38d   :  { %v1265_v36 = vrot.slane %v1264_v34, 1  ;;  %2006 = vrcp.f32 %v1533_v35 }
 0x38e   :  { %v1483_v37 = vpop.f32.mrf.mxu3 }
 0x38f   :  { %v1529_v38 = vsub.f32 %v1483_v37, %v1527_v31  ;;  %v1266_v39 = vadd.f32 %v1265_v36, %v1264_v34  ;;  %v1503_v40 = vpop.f32.mrf.mxu1 }
 0x390   :  { %v1530_v41 = vsub.f32 %v1503_v40, %v1528_v28 }
 0x391   :  { %1976 = vpush %v1266_v39 }
 0x392   :  { %v1534_v42 = vadd.f32 %v1530_v41, %v1529_v38 }
 0x393   :  { %v2007_v45 = vpop.eup %2006 }
 0x394   :  { %v1535_v43 = vadd.f32 58.5225, %v1534_v42  ;;  %v1537_v48 = vmul.f32 %v2007_v45, %v1533_v35 }
 0x396   :  { %v1591_v44 = vpop.f32.mrf.mxu3  ;;  %2008 = vrcp.f32 %v1535_v43  ;;  %v1538_v51 = vsub.f32 2.0, %v1537_v48 }
 0x397   :  { %v1651_v46 = vpop.f32.mrf.mxu1 }
 0x398   :  { %v1539_v62 = vmul.f32 %v2007_v45, %v1538_v51 }
 0x39c   :  { %v2009_v49 = vpop.eup %2008  ;;  %v1523_v50 = vpop.f32.mrf.mxu2 }
 0x39d   :  { %v1541_v53 = vmul.f32 %v2009_v49, %v1535_v43  ;;  %v1531_v54 = vsub.f32 %v1523_v50, %v1526_v47 }
 0x39e   :  { %v1594_v55 = vpop.f32.mrf.mxu3 }
 0x39f   :  { %1733 = vmatpush.msrb.mxu0 %v1594_v55  ;;  %v1542_v56 = vsub.f32 2.0, %v1541_v53  ;;  %v1546_v57 = vmul.f32 2.0, %v1531_v54  ;;  %v1654_v59 = vpop.f32.mrf.mxu1 }
 0x3a0   :  { %1773 = vmatpush.msra.mxu2 %v1654_v59 }
 0x3a1   :  { %1734 = vmatpush.msrb.mxu0 %v1591_v44  ;;  %v1547_v61 = vadd.f32 58.5225, %v1546_v57  ;;  %v1543_v63 = vmul.f32 %v2009_v49, %v1542_v56 }
 0x3a2   :  { %1965 = vmatmul.msk.f32.vlgmr.msrb.gmra.mxu0 %vm95_vm0, %v2215_v20  ;;  %1774 = vmatpush.msra.mxu2 %v1651_v46 }
 0x3a3   :  { %v1548_v2 = vmul.f32 %v1547_v61, %v1545_v60  ;;  %1967 = vmatmul.msk.f32.vlgmr.msra.gmra.mxu2 %vm95_vm0, %v2215_v20  ;;  %v1549_v3 = vmul.f32 %v1543_v63, %v1539_v62 }
 0x3a4   :  { %v1682_v4 = vpop.f32.mrf.mxu2 }
 0x3a5   :  { %v1550_v6 = vmul.f32 %v1549_v3, %v1548_v2 }
 0x3a6   :  { %v1713_v5 = vpop.f32.mrf.mxu3 }
 0x3a7   :  { %v1551_v7 = vmul.f32 %v2265_v14, %v1550_v6  ;;  %v1756_v15 = vpop.f32.mrf.mxu1 }
 0x3a8   :  { %v1821_v18 = vmul.f32 %v1756_v15, %v1756_v15 }
 0x3a9   :  { %1552 = vadd.xlane.f32.xlu2 %v1551_v7 }
 0x3ac   :  { %v1685_v8 = vpop.f32.mrf.mxu2 }
 0x3ad   :  { %1793 = vmatpush.msra.mxu0 %v1685_v8 }
 0x3ae   :  { %v1716_v9 = vpop.f32.mrf.mxu3 }
 0x3af   :  { %1813 = vmatpush.msrb.mxu1 %v1716_v9  ;;  %1794 = vmatpush.msra.mxu0 %v1682_v4 }
 0x3b0   :  { %1968 = vmatmul.msk.f32.vlgmr.msra.gmra.mxu0 %vm95_vm0, %v2215_v20 }
 0x3b1   :  { %1814 = vmatpush.msrb.mxu1 %v1713_v5 }
 0x3b2   :  { %1969 = vmatmul.msk.f32.vlgmr.msrb.gmra.mxu1 %vm95_vm0, %v2215_v20 }
 0x3c2   :  { %s1977_s12 = spop %1976 }
 0x41c   :  { %v1553_v10 = vpop.xlane.xlu2 %1552 }
 0x41d   :  { %v1554_v11 = vrot.slane %v1553_v10, 4 }
 0x41f   :  { %v1555_v12 = vadd.f32 %v1554_v11, %v1553_v10  ;;  %v1736_v13 = vpop.f32.mrf.mxu0 }
 0x420   :  { %v1820_v17 = vmul.f32 %v1736_v13, %v1736_v13  ;;  %v1819_v29 = vmul.f32 %v1756_v15, %v1736_v13 }
 0x421   :  { %v1556_v16 = vrot.slane %v1555_v12, 2 }
 0x422   :  { %v1825_v22 = vadd.f32 %v1821_v18, %v1820_v17  ;;  %v1837_v36 = vmul.f32 2.0, %v1819_v29 }
 0x423   :  { %v1557_v19 = vadd.f32 %v1556_v16, %v1555_v12 }
 0x424   :  { %v1826_v24 = vadd.f32 6.5025, %v1825_v22  ;;  %v1838_v40 = vadd.f32 6.5025, %v1837_v36 }
 0x425   :  { %v1558_v21 = vrot.slane %v1557_v19, 1 }
 0x426   :  { %v1776_v0 = vpop.f32.mrf.mxu2  ;;  %2010 = vrcp.f32 %v1826_v24 }
 0x427   :  { %v1559_v23 = vadd.f32 %v1558_v21, %v1557_v19  ;;  %v1822_v1 = vsub.f32 %v1776_v0, %v1820_v17 }
 0x429   :  { %1978 = vpush %v1559_v23 }
 0x42c   :  { %v2011_v30 = vpop.eup %2010 }
 0x42d   :  { %v1796_v25 = vpop.f32.mrf.mxu0  ;;  %v1830_v32 = vmul.f32 %v2011_v30, %v1826_v24 }
 0x42e   :  { %v1823_v26 = vsub.f32 %v1796_v25, %v1821_v18 }
 0x42f   :  { %v1816_v28 = vpop.f32.mrf.mxu1  ;;  %v1831_v35 = vsub.f32 2.0, %v1830_v32 }
 0x430   :  { %v1827_v20 = vadd.f32 %v1823_v26, %v1822_v1  ;;  %v1824_v31 = vsub.f32 %v1816_v28, %v1819_v29 }
 0x431   :  { %v1832_v41 = vmul.f32 %v2011_v30, %v1831_v35 }
 0x432   :  { %v1828_v27 = vadd.f32 58.5225, %v1827_v20  ;;  %v1839_v33 = vmul.f32 2.0, %v1824_v31 }
 0x434   :  { %2012 = vrcp.f32 %v1828_v27  ;;  %v1840_v39 = vadd.f32 58.5225, %v1839_v33 }
 0x436   :  { %v1841_v43 = vmul.f32 %v1840_v39, %v1838_v40 }
 0x43a   :  { %v2013_v34 = vpop.eup %2012 }
 0x43b   :  { %v1834_v37 = vmul.f32 %v2013_v34, %v1828_v27 }
 0x43d   :  { %v1835_v38 = vsub.f32 2.0, %v1834_v37 }
 0x43f   :  { %v1836_v42 = vmul.f32 %v2013_v34, %v1835_v38 }
 0x441   :  { %v1842_v44 = vmul.f32 %v1836_v42, %v1832_v41 }
 0x443   :  { %v1843_v45 = vmul.f32 %v1842_v44, %v1841_v43 }
 0x445   :  { %v1844_v46 = vmul.f32 %v2265_v14, %v1843_v45  ;;  %v974_v14 = vstv %s972_s14 }
 0x446   :  { %v975_v54 = vsel %vm973_vm4, %v974_v14, 0.0 }
 0x447   :  { %1845 = vadd.xlane.f32.xlu2 %v1844_v46 }
 0x45a   :  { %s1979_s13 = spop %1978 }
 0x45b   :  { %s1561_s15 = sadd.f32 %s1979_s13, %s1977_s12 }
 0x4ba   :  { %v1846_v47 = vpop.xlane.xlu2 %1845 }
 0x4bb   :  { %v1847_v48 = vrot.slane %v1846_v47, 4 }
 0x4bd   :  { %v1848_v49 = vadd.f32 %v1847_v48, %v1846_v47 }
 0x4bf   :  { %v1849_v50 = vrot.slane %v1848_v49, 2 }
 0x4c1   :  { %v1850_v51 = vadd.f32 %v1849_v50, %v1848_v49 }
 0x4c3   :  { %v1851_v52 = vrot.slane %v1850_v51, 1 }
 0x4c5   :  { %v1852_v53 = vadd.f32 %v1851_v52, %v1850_v51 }
 0x4c7   :  { %1980 = vpush %v1852_v53 }
 0x4f8   :  { %s1981_s16 = spop %1980 }
 0x4f9   :  { %s1854_s17 = sadd.f32 %s1981_s16, %s1561_s15 }
 0x4fb   :  { %s1855_s23 = smul.f32 0.009259259, %s1854_s17 }
 0x4fd   :  { %v1857_v55 = vstv %s1855_s23 }
 0x4fe   :  { %v1858_v56 = vsel %vm1856_vm5, %v1857_v55, %v975_v54 }
 0x4ff   :  { %1859 = vst [vmem:[#allocation10] sm:$0xff] %v1858_v56 }
 0x500   :  { %1870 = dma.vmem_to_hbm [thread:$0]  %s1866_s19, 128, %s1868_s22, [#allocation4]  }
 0x501   :  { %2140 = dma.done.wait [#allocation4], 128  }
 0x502   :  { %2141 = vsyncadd [#allocation4], 4294967168 }
 0x503   :  { %1875 = vsyncpa [#allocation3], 1 }
 0x504   :  { %1876 = vsyncpa [#allocation6], 1 }
 0x505   :  { %1877 = vsyncpa [#allocation9], 1 }
 0x506   :  { %1878 = vsyncpa [#allocation4], 1 }

</bundles_post_ra>
